<compile_context>
chip_gen: v7x
topology: tpu7x:2x2x1
jax: 0.10.0
libtpu: 0.0.40
codegen_flags: <defaults>
</compile_context>

<pallas_src>
import functools

import jax
import jax.numpy as jnp
from jax.experimental import pallas as pl
from jax.experimental.pallas import tpu as pltpu


_LANE = 128           # lane width (last-dim alignment)
_SUB = 8              # sublane width (second-to-last-dim alignment)
_MXU_M = 256          # target MXU M rows per recurrence matmul (v6e/v7x tile)
_MAX_CHUNK = 32       # timesteps per sequential grid step (statically unrolled)
_MAX_ROW_TILE = 512   # rows per projection grid step
_MAX_K_TILE = 512     # contraction tile for the projection
_CHUNK_VMEM_BUDGET = 24 * 1024 * 1024   # P + out double-buffered slabs (v7x-safe)


def _round_up(n, m):
    return ((n + m - 1) // m) * m


def _pick_tile(n, target, step):
    """Largest divisor of `n` that is a multiple of `step` and <= `target`."""
    best = step
    d = step
    limit = min(n, target)
    while d <= limit:
        if n % d == 0:
            best = d
        d += step
    return best


def _pad_axis(a, target, axis):
    pad = target - a.shape[axis]
    if pad == 0:
        return a
    widths = [(0, 0)] * a.ndim
    widths[axis] = (0, pad)
    return jnp.pad(a, widths)


def _const_block_spec(block_shape, index_map):
    """Constant-index block: single-buffer it (saves VMEM) when supported."""
    try:
        return pl.BlockSpec(block_shape, index_map, pipeline_mode=pl.Buffered(1))
    except Exception:  # older jax without pipeline_mode / Buffered
        return pl.BlockSpec(block_shape, index_map)


def _proj_kernel(x_ref, w_ref, b_ref, p_ref, acc_ref):
    """P = x @ W_ih^T + (b_ih + b_hh), K-tiled with a resident f32 accumulator.

    x_ref: (row_tile, k_tile)   flattened (batch*time, input) rows
    w_ref: (k_tile, H_pad)      input->hidden weight, transposed & zero-padded
    b_ref: (1, H_pad)           fused bias
    p_ref: (row_tile, H_pad)
    acc_ref: (row_tile, H_pad)  f32 accumulator scratch (resident across K)
    """
    k = pl.program_id(1)

    @pl.when(k == 0)
    def _():
        acc_ref[...] = jnp.zeros_like(acc_ref)

    acc_ref[...] += jnp.dot(
        x_ref[...], w_ref[...], preferred_element_type=jnp.float32
    )

    @pl.when(k == pl.num_programs(1) - 1)
    def _():
        p_ref[...] = (acc_ref[...] + b_ref[...]).astype(p_ref.dtype)


def _rnn_scan_kernel(p_ref, w_hh_ref, out_ref, h_ref, *, chunk):
    """h_t = tanh(P_t + h_{t-1} @ W_hh^T) over one (batch_tile, time_chunk) block.

    p_ref, out_ref: (b_tile, chunk, H_pad)  batch-major, so no HBM transposes
    w_hh_ref:       (H_pad, H_pad)          constant across grid, single-buffered
    h_ref:          (b_tile, H_pad)         VMEM scratch, carried across chunks
    """
    @pl.when(pl.program_id(1) == 0)  # first time chunk of this batch tile
    def _():
        h_ref[...] = jnp.zeros_like(h_ref)

    h = h_ref[...]
    # Static (fully unrolled) time loop: chunk is capped small, every P/out
    # access is a static slice, and the recurrence stays on the MXU.
    for i in range(chunk):
        h = jnp.tanh(
            p_ref[:, i, :]
            + jnp.dot(h, w_hh_ref[...], preferred_element_type=jnp.float32)
        )
        out_ref[:, i, :] = h.astype(out_ref.dtype)
    h_ref[...] = h


@jax.jit
def encoder_rnn_forward(x, w_ih, w_hh, b_ih, b_hh):
    """x: (B, T, I) float32. Returns (outputs (B, T, H), hidden (1, B, H))."""
    B, T, I = x.shape
    H = w_ih.shape[0]

    # ---- padded / tiled sizes -------------------------------------------
    H_pad = _round_up(H, _LANE)
    I_pad = _round_up(I, _LANE)          # lane-dense contraction dim
    B_pad = _round_up(B, _SUB)

    b_tile = _pick_tile(B_pad, _MXU_M, _SUB)   # feed the MXU many rows at once

    # VMEM-budgeted time chunk: 2 streams (P, out) x 2 buffers x f32 slabs.
    bytes_per_step = 2 * 2 * b_tile * H_pad * 4
    chunk = min(_MAX_CHUNK, T, max(1, _CHUNK_VMEM_BUDGET // bytes_per_step))
    if chunk < T:
        chunk = max(_SUB, (chunk // _SUB) * _SUB)  # middle block dim 8-aligned
    T_pad = _round_up(T, chunk)
    # TODO(synk): when T % chunk != 0 the final chunk runs up to chunk-1 dead
    # recurrence steps (outputs discarded); bounded by the small chunk cap.

    # ---- weights / bias: transpose + zero-pad (math stays exact) --------
    w_ih_t = _pad_axis(_pad_axis(jnp.transpose(w_ih), I_pad, 0), H_pad, 1)  # (I_pad, H_pad)
    w_hh_t = _pad_axis(_pad_axis(jnp.transpose(w_hh), H_pad, 0), H_pad, 1)  # (H_pad, H_pad)
    bias = _pad_axis((b_ih + b_hh).reshape(1, H), H_pad, 1)                 # (1, H_pad)

    # ---- input stays batch-major end-to-end: no HBM transposes ----------
    x_pad = _pad_axis(_pad_axis(_pad_axis(x, B_pad, 0), T_pad, 1), I_pad, 2)
    rows = B_pad * T_pad
    x_rows = x_pad.reshape(rows, I_pad)          # free reshape (contiguous)

    row_tile = _pick_tile(rows, _MAX_ROW_TILE, _SUB)
    k_tile = _pick_tile(I_pad, _MAX_K_TILE, _LANE)
    n_k = I_pad // k_tile

    if n_k > 1:
        w_ih_spec = pl.BlockSpec((k_tile, H_pad), lambda r, k: (k, 0))
    else:
        w_ih_spec = _const_block_spec((k_tile, H_pad), lambda r, k: (0, 0))

    proj_vmem = (2 * row_tile * k_tile * 4               # x tiles (double-buffered)
                 + (2 if n_k > 1 else 1) * k_tile * H_pad * 4
                 + 2 * H_pad * 4                          # bias
                 + 2 * row_tile * H_pad * 4               # P tiles (double-buffered)
                 + row_tile * H_pad * 4)                  # accumulator scratch

    # ---- parallel Pallas matmul: whole x projection, off the serial path.
    p_rows = pl.pallas_call(
        _proj_kernel,
        out_shape=jax.ShapeDtypeStruct((rows, H_pad), jnp.float32),
        grid_spec=pltpu.PrefetchScalarGridSpec(
            num_scalar_prefetch=0,
            grid=(rows // row_tile, n_k),
            in_specs=[
                pl.BlockSpec((row_tile, k_tile), lambda r, k: (r, k)),
                w_ih_spec,
                _const_block_spec((1, H_pad), lambda r, k: (0, 0)),
            ],
            out_specs=pl.BlockSpec((row_tile, H_pad), lambda r, k: (r, 0)),
            scratch_shapes=[pltpu.VMEM((row_tile, H_pad), jnp.float32)],
        ),
        compiler_params=pltpu.CompilerParams(
            dimension_semantics=("parallel", "arbitrary"),
            vmem_limit_bytes=int(min(max(2 * proj_vmem, 32 << 20), 128 << 20)),
        ),
        cost_estimate=pl.CostEstimate(
            flops=2 * rows * I_pad * H_pad,
            transcendentals=0,
            bytes_accessed=4 * (rows * I_pad + I_pad * H_pad + rows * H_pad),
        ),
    )(x_rows, w_ih_t, bias)
    p = p_rows.reshape(B_pad, T_pad, H_pad)      # free reshape (exact tiling)

    # ---- sequential Pallas kernel: recurrence only, time chunked inside.
    scan_vmem = (2 * 2 * chunk * b_tile * H_pad * 4   # P + out (double-buffered)
                 + H_pad * H_pad * 4                  # W_hh (single-buffered)
                 + b_tile * H_pad * 4)                # h scratch

    outputs_pad = pl.pallas_call(
        functools.partial(_rnn_scan_kernel, chunk=chunk),
        out_shape=jax.ShapeDtypeStruct((B_pad, T_pad, H_pad), jnp.float32),
        grid_spec=pltpu.PrefetchScalarGridSpec(
            num_scalar_prefetch=0,
            grid=(B_pad // b_tile, T_pad // chunk),
            in_specs=[
                pl.BlockSpec((b_tile, chunk, H_pad), lambda bt, tc: (bt, tc, 0)),
                _const_block_spec((H_pad, H_pad), lambda bt, tc: (0, 0)),
            ],
            out_specs=pl.BlockSpec((b_tile, chunk, H_pad),
                                   lambda bt, tc: (bt, tc, 0)),
            scratch_shapes=[pltpu.VMEM((b_tile, H_pad), jnp.float32)],
        ),
        compiler_params=pltpu.CompilerParams(
            # Batch tiles are independent (v7x megacore can split them across
            # its two TensorCores); time is a true recurrence -> innermost,
            # sequential ("arbitrary"), with h carried in VMEM scratch.
            dimension_semantics=("parallel", "arbitrary"),
            vmem_limit_bytes=int(min(max(2 * scan_vmem, 32 << 20), 128 << 20)),
        ),
        cost_estimate=pl.CostEstimate(
            flops=2 * T_pad * B_pad * H_pad * H_pad,
            transcendentals=T_pad * B_pad * H_pad,
            bytes_accessed=4 * (2 * T_pad * B_pad * H_pad + H_pad * H_pad),
        ),
    )(p, w_hh_t)

    outputs = outputs_pad[:B, :T, :H]            # drop batch / time / lane padding
    hidden = outputs[:, T - 1, :][None]          # (1, B, H): last output row
    return outputs, hidden


def _reference_rnn(x, w_ih, w_hh, b_ih, b_hh):
    """Pure-JAX reference matching nn.RNN(batch_first=True) semantics."""
    B, T, _ = x.shape
    H = w_ih.shape[0]
    h = jnp.zeros((B, H), x.dtype)
    outs = []
    for t in range(T):
        h = jnp.tanh(x[:, t] @ w_ih.T + b_ih + h @ w_hh.T + b_hh)
        outs.append(h)
    return jnp.stack(outs, axis=1), h[None]


if __name__ == "__main__":
    hidden_size = 10
    input_size = 5
    batch = 2
    seq = 8

    key = jax.random.PRNGKey(0)
    k_x, k_wih, k_whh, k_bih, k_bhh = jax.random.split(key, 5)

    # PyTorch nn.RNN init: U(-1/sqrt(H), 1/sqrt(H)), deterministic here.
    bound = 1.0 / jnp.sqrt(hidden_size)
    w_ih = jax.random.uniform(k_wih, (hidden_size, input_size), jnp.float32, -bound, bound)
    w_hh = jax.random.uniform(k_whh, (hidden_size, hidden_size), jnp.float32, -bound, bound)
    b_ih = jax.random.uniform(k_bih, (hidden_size,), jnp.float32, -bound, bound)
    b_hh = jax.random.uniform(k_bhh, (hidden_size,), jnp.float32, -bound, bound)

    x = jax.random.normal(k_x, (batch, seq, input_size), jnp.float32)

    outputs, hidden = encoder_rnn_forward(x, w_ih, w_hh, b_ih, b_hh)
    outputs = jax.block_until_ready(outputs)
    hidden = jax.block_until_ready(hidden)

    ref_out, ref_hid = _reference_rnn(x, w_ih, w_hh, b_ih, b_hh)

    assert outputs.shape == (batch, seq, hidden_size)
    assert hidden.shape == (1, batch, hidden_size)
    assert jnp.allclose(outputs, ref_out, atol=1e-5, rtol=1e-5)
    assert jnp.allclose(hidden, ref_hid, atol=1e-5, rtol=1e-5)

    print("KERNEL_OK")
</pallas_src>

<mosaic_0001>
module attributes {stable_mosaic.version = 11 : i64} {
  func.func @_proj_kernel(%arg0: i32, %arg1: i32, %arg2: memref<64x128xf32, #tpu.memory_space<vmem>>, %arg3: memref<128x128xf32, #tpu.memory_space<vmem>>, %arg4: memref<1x128xf32, #tpu.memory_space<vmem>>, %arg5: memref<64x128xf32, #tpu.memory_space<vmem>>, %arg6: memref<64x128xf32, #tpu.memory_space<vmem>>) attributes {dimension_semantics = [#tpu.dimension_semantics<parallel>, #tpu.dimension_semantics<arbitrary>], iteration_bounds = array<i64: 1, 1>, scalar_prefetch = 0 : i64, scratch_operands = 1 : i64, tpu.core_type = #tpu.core_type<tc>, window_params = [{transform_indices = @transform_0, window_bounds = array<i64: 64, 128>}, {pipeline_mode = #tpu.pipeline_mode<synchronous>, transform_indices = @transform_1, window_bounds = array<i64: 128, 128>}, {pipeline_mode = #tpu.pipeline_mode<synchronous>, transform_indices = @transform_2, window_bounds = array<i64: 1, 128>}, {transform_indices = @transform_3, window_bounds = array<i64: 64, 128>}]} {
    %c0_i32 = arith.constant 0 : i32
    %0 = arith.cmpi eq, %arg1, %c0_i32 : i32
    %1 = arith.extui %0 : i1 to i32
    %c0_i32_0 = arith.constant 0 : i32
    %2 = arith.cmpi ne, %1, %c0_i32_0 : i32
    scf.if %2 {
      %cst_10 = arith.constant 0.000000e+00 : f32
      %12 = vector.broadcast %cst_10 : f32 to vector<64x128xf32>
      %c0_11 = arith.constant 0 : index
      %c0_12 = arith.constant 0 : index
      %13 = vector.load %arg6[%c0_11, %c0_12] : memref<64x128xf32, #tpu.memory_space<vmem>>, vector<64x128xf32>
      tpu.vector_store %arg6[%c0_11, %c0_12], %12 {strides = array<i32>} : memref<64x128xf32, #tpu.memory_space<vmem>>, vector<64x128xf32>,
    } else {
    }
    %c0 = arith.constant 0 : index
    %c0_1 = arith.constant 0 : index
    %3 = vector.load %arg6[%c0, %c0_1] : memref<64x128xf32, #tpu.memory_space<vmem>>, vector<64x128xf32>
    %c0_2 = arith.constant 0 : index
    %c0_3 = arith.constant 0 : index
    %4 = vector.load %arg2[%c0_2, %c0_3] : memref<64x128xf32, #tpu.memory_space<vmem>>, vector<64x128xf32>
    %c0_4 = arith.constant 0 : index
    %c0_5 = arith.constant 0 : index
    %5 = vector.load %arg3[%c0_4, %c0_5] : memref<128x128xf32, #tpu.memory_space<vmem>>, vector<128x128xf32>
    %cst = arith.constant dense<0.000000e+00> : vector<64x128xf32>
    %6 = tpu.matmul %4, %5, %cst {dimension_numbers = #tpu.dot_dimension_numbers<[1], [0], [0], [1], [0, 0, 1, 1], [], []>} : vector<64x128xf32>, vector<128x128xf32>, vector<64x128xf32> -> vector<64x128xf32>
    %7 = arith.addf %3, %6 : vector<64x128xf32>
    %c0_6 = arith.constant 0 : index
    %c0_7 = arith.constant 0 : index
    %8 = vector.load %arg6[%c0_6, %c0_7] : memref<64x128xf32, #tpu.memory_space<vmem>>, vector<64x128xf32>
    tpu.vector_store %arg6[%c0_6, %c0_7], %7 {strides = array<i32>} : memref<64x128xf32, #tpu.memory_space<vmem>>, vector<64x128xf32>,
    %c0_i32_8 = arith.constant 0 : i32
    %9 = arith.cmpi eq, %arg1, %c0_i32_8 : i32
    %10 = arith.extui %9 : i1 to i32
    %c0_i32_9 = arith.constant 0 : i32
    %11 = arith.cmpi ne, %10, %c0_i32_9 : i32
    scf.if %11 {
      %c0_10 = arith.constant 0 : index
      %c0_11 = arith.constant 0 : index
      %12 = vector.load %arg6[%c0_10, %c0_11] : memref<64x128xf32, #tpu.memory_space<vmem>>, vector<64x128xf32>
      %c0_12 = arith.constant 0 : index
      %c0_13 = arith.constant 0 : index
      %13 = vector.load %arg4[%c0_12, %c0_13] : memref<1x128xf32, #tpu.memory_space<vmem>>, vector<1x128xf32>
      %14 = vector.broadcast %13 : vector<1x128xf32> to vector<64x128xf32>
      %15 = arith.addf %12, %14 : vector<64x128xf32>
      %c0_14 = arith.constant 0 : index
      %c0_15 = arith.constant 0 : index
      %16 = vector.load %arg5[%c0_14, %c0_15] : memref<64x128xf32, #tpu.memory_space<vmem>>, vector<64x128xf32>
      tpu.vector_store %arg5[%c0_14, %c0_15], %15 {strides = array<i32>} : memref<64x128xf32, #tpu.memory_space<vmem>>, vector<64x128xf32>,
    } else {
    }
    return
  }
  func.func @transform_0(%arg0: i32, %arg1: i32) -> (i32, i32) {
    %c0_i32 = arith.constant 0 : i32
    return %arg0, %arg1 : i32, i32
  }
  func.func @transform_1(%arg0: i32, %arg1: i32) -> (i32, i32) {
    %c0_i32 = arith.constant 0 : i32
    %c0_i32_0 = arith.constant 0 : i32
    %c0_i32_1 = arith.constant 0 : i32
    return %c0_i32, %c0_i32_0 : i32, i32
  }
  func.func @transform_2(%arg0: i32, %arg1: i32) -> (i32, i32) {
    %c0_i32 = arith.constant 0 : i32
    %c0_i32_0 = arith.constant 0 : i32
    %c0_i32_1 = arith.constant 0 : i32
    return %c0_i32, %c0_i32_0 : i32, i32
  }
  func.func @transform_3(%arg0: i32, %arg1: i32) -> (i32, i32) {
    %c0_i32 = arith.constant 0 : i32
    %c0_i32_0 = arith.constant 0 : i32
    return %arg0, %c0_i32 : i32, i32
  }
}

module attributes {stable_mosaic.version = 11 : i64} {
  func.func @_rnn_scan_kernel(%arg0: i32, %arg1: i32, %arg2: memref<8x8x128xf32, #tpu.memory_space<vmem>>, %arg3: memref<128x128xf32, #tpu.memory_space<vmem>>, %arg4: memref<8x8x128xf32, #tpu.memory_space<vmem>>, %arg5: memref<8x128xf32, #tpu.memory_space<vmem>>) attributes {dimension_semantics = [#tpu.dimension_semantics<parallel>, #tpu.dimension_semantics<arbitrary>], iteration_bounds = array<i64: 1, 1>, scalar_prefetch = 0 : i64, scratch_operands = 1 : i64, tpu.core_type = #tpu.core_type<tc>, window_params = [{transform_indices = @transform_0, window_bounds = array<i64: 8, 8, 128>}, {pipeline_mode = #tpu.pipeline_mode<synchronous>, transform_indices = @transform_1, window_bounds = array<i64: 128, 128>}, {transform_indices = @transform_2, window_bounds = array<i64: 8, 8, 128>}]} {
    %c0_i32 = arith.constant 0 : i32
    %0 = arith.cmpi eq, %arg1, %c0_i32 : i32
    %1 = arith.extui %0 : i1 to i32
    %c0_i32_0 = arith.constant 0 : i32
    %2 = arith.cmpi ne, %1, %c0_i32_0 : i32
    scf.if %2 {
      %cst_68 = arith.constant 0.000000e+00 : f32
      %77 = vector.broadcast %cst_68 : f32 to vector<8x128xf32>
      %c0_69 = arith.constant 0 : index
      %c0_70 = arith.constant 0 : index
      %78 = vector.load %arg5[%c0_69, %c0_70] : memref<8x128xf32, #tpu.memory_space<vmem>>, vector<8x128xf32>
      tpu.vector_store %arg5[%c0_69, %c0_70], %77 {strides = array<i32>} : memref<8x128xf32, #tpu.memory_space<vmem>>, vector<8x128xf32>,
    } else {
    }
    %c0 = arith.constant 0 : index
    %c0_1 = arith.constant 0 : index
    %3 = vector.load %arg5[%c0, %c0_1] : memref<8x128xf32, #tpu.memory_space<vmem>>, vector<8x128xf32>
    %c0_2 = arith.constant 0 : index
    %c0_3 = arith.constant 0 : index
    %c0_4 = arith.constant 0 : index
    %4 = vector.load %arg2[%c0_2, %c0_3, %c0_4] : memref<8x8x128xf32, #tpu.memory_space<vmem>>, vector<8x1x128xf32>
    %5 = vector.shape_cast %4 : vector<8x1x128xf32> to vector<8x128xf32>
    %c0_5 = arith.constant 0 : index
    %c0_6 = arith.constant 0 : index
    %6 = vector.load %arg3[%c0_5, %c0_6] : memref<128x128xf32, #tpu.memory_space<vmem>>, vector<128x128xf32>
    %cst = arith.constant dense<0.000000e+00> : vector<8x128xf32>
    %7 = tpu.matmul %3, %6, %cst {dimension_numbers = #tpu.dot_dimension_numbers<[1], [0], [0], [1], [0, 0, 1, 1], [], []>} : vector<8x128xf32>, vector<128x128xf32>, vector<8x128xf32> -> vector<8x128xf32>
    %8 = arith.addf %5, %7 : vector<8x128xf32>
    %9 = math.tanh %8 : vector<8x128xf32>
    %c0_7 = arith.constant 0 : index
    %c0_8 = arith.constant 0 : index
    %c0_9 = arith.constant 0 : index
    %10 = vector.load %arg4[%c0_7, %c0_8, %c0_9] : memref<8x8x128xf32, #tpu.memory_space<vmem>>, vector<8x1x128xf32>
    %11 = vector.shape_cast %10 : vector<8x1x128xf32> to vector<8x128xf32>
    %12 = vector.shape_cast %9 : vector<8x128xf32> to vector<8x1x128xf32>
    tpu.vector_store %arg4[%c0_7, %c0_8, %c0_9], %12 {strides = array<i32>} : memref<8x8x128xf32, #tpu.memory_space<vmem>>, vector<8x1x128xf32>,
    %c0_10 = arith.constant 0 : index
    %c1 = arith.constant 1 : index
    %c0_11 = arith.constant 0 : index
    %13 = vector.load %arg2[%c0_10, %c1, %c0_11] : memref<8x8x128xf32, #tpu.memory_space<vmem>>, vector<8x1x128xf32>
    %14 = vector.shape_cast %13 : vector<8x1x128xf32> to vector<8x128xf32>
    %c0_12 = arith.constant 0 : index
    %c0_13 = arith.constant 0 : index
    %15 = vector.load %arg3[%c0_12, %c0_13] : memref<128x128xf32, #tpu.memory_space<vmem>>, vector<128x128xf32>
    %cst_14 = arith.constant dense<0.000000e+00> : vector<8x128xf32>
    %16 = tpu.matmul %9, %15, %cst_14 {dimension_numbers = #tpu.dot_dimension_numbers<[1], [0], [0], [1], [0, 0, 1, 1], [], []>} : vector<8x128xf32>, vector<128x128xf32>, vector<8x128xf32> -> vector<8x128xf32>
    %17 = arith.addf %14, %16 : vector<8x128xf32>
    %18 = math.tanh %17 : vector<8x128xf32>
    %c0_15 = arith.constant 0 : index
    %c1_16 = arith.constant 1 : index
    %c0_17 = arith.constant 0 : index
    %19 = vector.load %arg4[%c0_15, %c1_16, %c0_17] : memref<8x8x128xf32, #tpu.memory_space<vmem>>, vector<8x1x128xf32>
    %20 = vector.shape_cast %19 : vector<8x1x128xf32> to vector<8x128xf32>
    %21 = vector.shape_cast %18 : vector<8x128xf32> to vector<8x1x128xf32>
    tpu.vector_store %arg4[%c0_15, %c1_16, %c0_17], %21 {strides = array<i32>} : memref<8x8x128xf32, #tpu.memory_space<vmem>>, vector<8x1x128xf32>,
    %c0_18 = arith.constant 0 : index
    %c2 = arith.constant 2 : index
    %c0_19 = arith.constant 0 : index
    %22 = vector.load %arg2[%c0_18, %c2, %c0_19] : memref<8x8x128xf32, #tpu.memory_space<vmem>>, vector<8x1x128xf32>
    %23 = vector.shape_cast %22 : vector<8x1x128xf32> to vector<8x128xf32>
    %c0_20 = arith.constant 0 : index
    %c0_21 = arith.constant 0 : index
    %24 = vector.load %arg3[%c0_20, %c0_21] : memref<128x128xf32, #tpu.memory_space<vmem>>, vector<128x128xf32>
    %cst_22 = arith.constant dense<0.000000e+00> : vector<8x128xf32>
    %25 = tpu.matmul %18, %24, %cst_22 {dimension_numbers = #tpu.dot_dimension_numbers<[1], [0], [0], [1], [0, 0, 1, 1], [], []>} : vector<8x128xf32>, vector<128x128xf32>, vector<8x128xf32> -> vector<8x128xf32>
    %26 = arith.addf %23, %25 : vector<8x128xf32>
    %27 = math.tanh %26 : vector<8x128xf32>
    %c0_23 = arith.constant 0 : index
    %c2_24 = arith.constant 2 : index
    %c0_25 = arith.constant 0 : index
    %28 = vector.load %arg4[%c0_23, %c2_24, %c0_25] : memref<8x8x128xf32, #tpu.memory_space<vmem>>, vector<8x1x128xf32>
    %29 = vector.shape_cast %28 : vector<8x1x128xf32> to vector<8x128xf32>
    %30 = vector.shape_cast %27 : vector<8x128xf32> to vector<8x1x128xf32>
    tpu.vector_store %arg4[%c0_23, %c2_24, %c0_25], %30 {strides = array<i32>} : memref<8x8x128xf32, #tpu.memory_space<vmem>>, vector<8x1x128xf32>,
    %c0_26 = arith.constant 0 : index
    %c3 = arith.constant 3 : index
    %c0_27 = arith.constant 0 : index
    %31 = vector.load %arg2[%c0_26, %c3, %c0_27] : memref<8x8x128xf32, #tpu.memory_space<vmem>>, vector<8x1x128xf32>
    %32 = vector.shape_cast %31 : vector<8x1x128xf32> to vector<8x128xf32>
    %c0_28 = arith.constant 0 : index
    %c0_29 = arith.constant 0 : index
    %33 = vector.load %arg3[%c0_28, %c0_29] : memref<128x128xf32, #tpu.memory_space<vmem>>, vector<128x128xf32>
    %cst_30 = arith.constant dense<0.000000e+00> : vector<8x128xf32>
    %34 = tpu.matmul %27, %33, %cst_30 {dimension_numbers = #tpu.dot_dimension_numbers<[1], [0], [0], [1], [0, 0, 1, 1], [], []>} : vector<8x128xf32>, vector<128x128xf32>, vector<8x128xf32> -> vector<8x128xf32>
    %35 = arith.addf %32, %34 : vector<8x128xf32>
    %36 = math.tanh %35 : vector<8x128xf32>
    %c0_31 = arith.constant 0 : index
    %c3_32 = arith.constant 3 : index
    %c0_33 = arith.constant 0 : index
    %37 = vector.load %arg4[%c0_31, %c3_32, %c0_33] : memref<8x8x128xf32, #tpu.memory_space<vmem>>, vector<8x1x128xf32>
    %38 = vector.shape_cast %37 : vector<8x1x128xf32> to vector<8x128xf32>
    %39 = vector.shape_cast %36 : vector<8x128xf32> to vector<8x1x128xf32>
    tpu.vector_store %arg4[%c0_31, %c3_32, %c0_33], %39 {strides = array<i32>} : memref<8x8x128xf32, #tpu.memory_space<vmem>>, vector<8x1x128xf32>,
    %c0_34 = arith.constant 0 : index
    %c4 = arith.constant 4 : index
    %c0_35 = arith.constant 0 : index
    %40 = vector.load %arg2[%c0_34, %c4, %c0_35] : memref<8x8x128xf32, #tpu.memory_space<vmem>>, vector<8x1x128xf32>
    %41 = vector.shape_cast %40 : vector<8x1x128xf32> to vector<8x128xf32>
    %c0_36 = arith.constant 0 : index
    %c0_37 = arith.constant 0 : index
    %42 = vector.load %arg3[%c0_36, %c0_37] : memref<128x128xf32, #tpu.memory_space<vmem>>, vector<128x128xf32>
    %cst_38 = arith.constant dense<0.000000e+00> : vector<8x128xf32>
    %43 = tpu.matmul %36, %42, %cst_38 {dimension_numbers = #tpu.dot_dimension_numbers<[1], [0], [0], [1], [0, 0, 1, 1], [], []>} : vector<8x128xf32>, vector<128x128xf32>, vector<8x128xf32> -> vector<8x128xf32>
    %44 = arith.addf %41, %43 : vector<8x128xf32>
    %45 = math.tanh %44 : vector<8x128xf32>
    %c0_39 = arith.constant 0 : index
    %c4_40 = arith.constant 4 : index
    %c0_41 = arith.constant 0 : index
    %46 = vector.load %arg4[%c0_39, %c4_40, %c0_41] : memref<8x8x128xf32, #tpu.memory_space<vmem>>, vector<8x1x128xf32>
    %47 = vector.shape_cast %46 : vector<8x1x128xf32> to vector<8x128xf32>
    %48 = vector.shape_cast %45 : vector<8x128xf32> to vector<8x1x128xf32>
    tpu.vector_store %arg4[%c0_39, %c4_40, %c0_41], %48 {strides = array<i32>} : memref<8x8x128xf32, #tpu.memory_space<vmem>>, vector<8x1x128xf32>,
    %c0_42 = arith.constant 0 : index
    %c5 = arith.constant 5 : index
    %c0_43 = arith.constant 0 : index
    %49 = vector.load %arg2[%c0_42, %c5, %c0_43] : memref<8x8x128xf32, #tpu.memory_space<vmem>>, vector<8x1x128xf32>
    %50 = vector.shape_cast %49 : vector<8x1x128xf32> to vector<8x128xf32>
    %c0_44 = arith.constant 0 : index
    %c0_45 = arith.constant 0 : index
    %51 = vector.load %arg3[%c0_44, %c0_45] : memref<128x128xf32, #tpu.memory_space<vmem>>, vector<128x128xf32>
    %cst_46 = arith.constant dense<0.000000e+00> : vector<8x128xf32>
    %52 = tpu.matmul %45, %51, %cst_46 {dimension_numbers = #tpu.dot_dimension_numbers<[1], [0], [0], [1], [0, 0, 1, 1], [], []>} : vector<8x128xf32>, vector<128x128xf32>, vector<8x128xf32> -> vector<8x128xf32>
    %53 = arith.addf %50, %52 : vector<8x128xf32>
    %54 = math.tanh %53 : vector<8x128xf32>
    %c0_47 = arith.constant 0 : index
    %c5_48 = arith.constant 5 : index
    %c0_49 = arith.constant 0 : index
    %55 = vector.load %arg4[%c0_47, %c5_48, %c0_49] : memref<8x8x128xf32, #tpu.memory_space<vmem>>, vector<8x1x128xf32>
    %56 = vector.shape_cast %55 : vector<8x1x128xf32> to vector<8x128xf32>
    %57 = vector.shape_cast %54 : vector<8x128xf32> to vector<8x1x128xf32>
    tpu.vector_store %arg4[%c0_47, %c5_48, %c0_49], %57 {strides = array<i32>} : memref<8x8x128xf32, #tpu.memory_space<vmem>>, vector<8x1x128xf32>,
    %c0_50 = arith.constant 0 : index
    %c6 = arith.constant 6 : index
    %c0_51 = arith.constant 0 : index
    %58 = vector.load %arg2[%c0_50, %c6, %c0_51] : memref<8x8x128xf32, #tpu.memory_space<vmem>>, vector<8x1x128xf32>
    %59 = vector.shape_cast %58 : vector<8x1x128xf32> to vector<8x128xf32>
    %c0_52 = arith.constant 0 : index
    %c0_53 = arith.constant 0 : index
    %60 = vector.load %arg3[%c0_52, %c0_53] : memref<128x128xf32, #tpu.memory_space<vmem>>, vector<128x128xf32>
    %cst_54 = arith.constant dense<0.000000e+00> : vector<8x128xf32>
    %61 = tpu.matmul %54, %60, %cst_54 {dimension_numbers = #tpu.dot_dimension_numbers<[1], [0], [0], [1], [0, 0, 1, 1], [], []>} : vector<8x128xf32>, vector<128x128xf32>, vector<8x128xf32> -> vector<8x128xf32>
    %62 = arith.addf %59, %61 : vector<8x128xf32>
    %63 = math.tanh %62 : vector<8x128xf32>
    %c0_55 = arith.constant 0 : index
    %c6_56 = arith.constant 6 : index
    %c0_57 = arith.constant 0 : index
    %64 = vector.load %arg4[%c0_55, %c6_56, %c0_57] : memref<8x8x128xf32, #tpu.memory_space<vmem>>, vector<8x1x128xf32>
    %65 = vector.shape_cast %64 : vector<8x1x128xf32> to vector<8x128xf32>
    %66 = vector.shape_cast %63 : vector<8x128xf32> to vector<8x1x128xf32>
    tpu.vector_store %arg4[%c0_55, %c6_56, %c0_57], %66 {strides = array<i32>} : memref<8x8x128xf32, #tpu.memory_space<vmem>>, vector<8x1x128xf32>,
    %c0_58 = arith.constant 0 : index
    %c7 = arith.constant 7 : index
    %c0_59 = arith.constant 0 : index
    %67 = vector.load %arg2[%c0_58, %c7, %c0_59] : memref<8x8x128xf32, #tpu.memory_space<vmem>>, vector<8x1x128xf32>
    %68 = vector.shape_cast %67 : vector<8x1x128xf32> to vector<8x128xf32>
    %c0_60 = arith.constant 0 : index
    %c0_61 = arith.constant 0 : index
    %69 = vector.load %arg3[%c0_60, %c0_61] : memref<128x128xf32, #tpu.memory_space<vmem>>, vector<128x128xf32>
    %cst_62 = arith.constant dense<0.000000e+00> : vector<8x128xf32>
    %70 = tpu.matmul %63, %69, %cst_62 {dimension_numbers = #tpu.dot_dimension_numbers<[1], [0], [0], [1], [0, 0, 1, 1], [], []>} : vector<8x128xf32>, vector<128x128xf32>, vector<8x128xf32> -> vector<8x128xf32>
    %71 = arith.addf %68, %70 : vector<8x128xf32>
    %72 = math.tanh %71 : vector<8x128xf32>
    %c0_63 = arith.constant 0 : index
    %c7_64 = arith.constant 7 : index
    %c0_65 = arith.constant 0 : index
    %73 = vector.load %arg4[%c0_63, %c7_64, %c0_65] : memref<8x8x128xf32, #tpu.memory_space<vmem>>, vector<8x1x128xf32>
    %74 = vector.shape_cast %73 : vector<8x1x128xf32> to vector<8x128xf32>
    %75 = vector.shape_cast %72 : vector<8x128xf32> to vector<8x1x128xf32>
    tpu.vector_store %arg4[%c0_63, %c7_64, %c0_65], %75 {strides = array<i32>} : memref<8x8x128xf32, #tpu.memory_space<vmem>>, vector<8x1x128xf32>,
    %c0_66 = arith.constant 0 : index
    %c0_67 = arith.constant 0 : index
    %76 = vector.load %arg5[%c0_66, %c0_67] : memref<8x128xf32, #tpu.memory_space<vmem>>, vector<8x128xf32>
    tpu.vector_store %arg5[%c0_66, %c0_67], %72 {strides = array<i32>} : memref<8x128xf32, #tpu.memory_space<vmem>>, vector<8x128xf32>,
    return
  }
  func.func @transform_0(%arg0: i32, %arg1: i32) -> (i32, i32, i32) {
    %c0_i32 = arith.constant 0 : i32
    %c0_i32_0 = arith.constant 0 : i32
    return %arg0, %arg1, %c0_i32 : i32, i32, i32
  }
  func.func @transform_1(%arg0: i32, %arg1: i32) -> (i32, i32) {
    %c0_i32 = arith.constant 0 : i32
    %c0_i32_0 = arith.constant 0 : i32
    %c0_i32_1 = arith.constant 0 : i32
    return %c0_i32, %c0_i32_0 : i32, i32
  }
  func.func @transform_2(%arg0: i32, %arg1: i32) -> (i32, i32, i32) {
    %c0_i32 = arith.constant 0 : i32
    %c0_i32_0 = arith.constant 0 : i32
    return %arg0, %arg1, %c0_i32 : i32, i32, i32
  }
}

</mosaic_0001>

<bundles_post_ra>
// kernel: encoder_rnn_forward.2
= control target key start
LH: loop header
LB: loop body
LE: loop exit
PB: predicated region body
PF: predicated region fallthrough
CT: control target
= control target key end

     0   :  { %s453_s1 = inlined_call_operand.vmem [shape: f32[128,128], index: 1, kind: input, shape index: {}]   ;;  %s454_s0 = inlined_call_operand.vmem [shape: f32[64,128], index: 0, kind: input, shape index: {}]   ;;  %s455_s2 = inlined_call_operand.vmem [shape: f32[1,128], index: 2, kind: input, shape index: {}]   ;;  %s456_s3 = inlined_call_operand.vmem [shape: f32[64,128], index: 3, kind: output, shape index: {}]  }
   0x1   :  { %v42_v0 = vld [vmem:[%s453_s1] sm:$0xff]  ;;  %v43_v1 = vld [vmem:[%s453_s1 + $0x8] sm:$0xff]  ;;  %v44_v2 = vld [vmem:[%s453_s1 + $0x10] sm:$0xff] }
   0x2   :  { %v286_v3 = vpack.c.bf16 %v43_v1, %v42_v0  ;;  %v45_v4 = vld [vmem:[%s453_s1 + $0x18] sm:$0xff]  ;;  %v46_v6 = vld [vmem:[%s453_s1 + $0x20] sm:$0xff]  ;;  %v47_v7 = vld [vmem:[%s453_s1 + $0x28] sm:$0xff] }
   0x3   :  { %v290_v5 = vpack.c.bf16 %v45_v4, %v44_v2  ;;  %v294_v8 = vpack.c.bf16 %v47_v7, %v46_v6  ;;  %v34_v9 = vld [vmem:[%s454_s0] sm:$0xff]  ;;  %v48_v11 = vld [vmem:[%s453_s1 + $0x30] sm:$0xff]  ;;  %v49_v12 = vld [vmem:[%s453_s1 + $0x38] sm:$0xff] }
   0x4   :  { %287 = vmatprep.subr.bf16.mxu0 %v286_v3  ;;  %318 = vmatprep.subr.bf16.mxu1 %v286_v3  ;;  %v38_v10 = vld [vmem:[%s454_s0 + $0x20] sm:$0xff]  ;;  %v298_v13 = vpack.c.bf16 %v49_v12, %v48_v11  ;;  %v51_v15 = vld [vmem:[%s453_s1 + $0x48] sm:$0xff]  ;;  %v52_v17 = vld [vmem:[%s453_s1 + $0x50] sm:$0xff] }
   0x5   :  { %289 = vmatpush3.bf16.msra.mxu0 %v286_v3  ;;  %326 = vmatpush3.bf16.msra.mxu1 %v286_v3  ;;  %v50_v14 = vld [vmem:[%s453_s1 + $0x40] sm:$0xff]  ;;  %v53_v18 = vld [vmem:[%s453_s1 + $0x58] sm:$0xff]  ;;  %v55_v21 = vld [vmem:[%s453_s1 + $0x68] sm:$0xff] }
   0x6   :  { %291 = vmatprep.subr.bf16.mxu0 %v290_v5  ;;  %319 = vmatprep.subr.bf16.mxu1 %v290_v5  ;;  %v302_v16 = vpack.c.bf16 %v51_v15, %v50_v14  ;;  %v306_v19 = vpack.c.bf16 %v53_v18, %v52_v17  ;;  %v54_v20 = vld [vmem:[%s453_s1 + $0x60] sm:$0xff]  ;;  %v56_v23 = vld [vmem:[%s453_s1 + $0x70] sm:$0xff]  ;;  %v57_v24 = vld [vmem:[%s453_s1 + $0x78] sm:$0xff] }
   0x7   :  { %274 = vmatprep.mubr.f32.mxu0 %v34_v9  ;;  %280 = vmatprep.mubr.f32.mxu1 %v38_v10  ;;  %v310_v22 = vpack.c.bf16 %v55_v21, %v54_v20  ;;  %v314_v25 = vpack.c.bf16 %v57_v24, %v56_v23  ;;  %v35_v26 = vld [vmem:[%s454_s0 + $0x8] sm:$0xff]  ;;  %v36_v28 = vld [vmem:[%s454_s0 + $0x10] sm:$0xff]  ;;  %v37_v30 = vld [vmem:[%s454_s0 + $0x18] sm:$0xff] }
   0x8   :  { %v39_v27 = vld [vmem:[%s454_s0 + $0x28] sm:$0xff]  ;;  %v40_v29 = vld [vmem:[%s454_s0 + $0x30] sm:$0xff]  ;;  %v41_v31 = vld [vmem:[%s454_s0 + $0x38] sm:$0xff] }
   0x9   :  { %293 = vmatpush3.bf16.msra.mxu0 %v290_v5  ;;  %327 = vmatpush3.bf16.msra.mxu1 %v290_v5  ;;  %v217_v32 = vld [vmem:[%s455_s2] ss:$0 sm:$0xff] }
   0xa   :  { %295 = vmatprep.subr.bf16.mxu0 %v294_v8  ;;  %320 = vmatprep.subr.bf16.mxu1 %v294_v8 }
   0xd   :  { %297 = vmatpush3.bf16.msra.mxu0 %v294_v8  ;;  %328 = vmatpush3.bf16.msra.mxu1 %v294_v8 }
   0xe   :  { %299 = vmatprep.subr.bf16.mxu0 %v298_v13  ;;  %321 = vmatprep.subr.bf16.mxu1 %v298_v13 }
  0x11   :  { %301 = vmatpush3.bf16.msra.mxu0 %v298_v13  ;;  %329 = vmatpush3.bf16.msra.mxu1 %v298_v13 }
  0x12   :  { %303 = vmatprep.subr.bf16.mxu0 %v302_v16  ;;  %322 = vmatprep.subr.bf16.mxu1 %v302_v16 }
  0x15   :  { %305 = vmatpush3.bf16.msra.mxu0 %v302_v16  ;;  %330 = vmatpush3.bf16.msra.mxu1 %v302_v16 }
  0x16   :  { %307 = vmatprep.subr.bf16.mxu0 %v306_v19  ;;  %323 = vmatprep.subr.bf16.mxu1 %v306_v19 }
  0x19   :  { %309 = vmatpush3.bf16.msra.mxu0 %v306_v19  ;;  %331 = vmatpush3.bf16.msra.mxu1 %v306_v19 }
  0x1a   :  { %311 = vmatprep.subr.bf16.mxu0 %v310_v22  ;;  %324 = vmatprep.subr.bf16.mxu1 %v310_v22 }
  0x1d   :  { %313 = vmatpush3.bf16.msra.mxu0 %v310_v22  ;;  %332 = vmatpush3.bf16.msra.mxu1 %v310_v22 }
  0x1e   :  { %315 = vmatprep.subr.bf16.mxu0 %v314_v25  ;;  %325 = vmatprep.subr.bf16.mxu1 %v314_v25 }
  0x21   :  { %317 = vmatpush3.bf16.msra.mxu0 %v314_v25  ;;  %333 = vmatpush3.bf16.msra.mxu1 %v314_v25 }
  0x24   :  { %275 = vmatmul.mubr.f32.vlgmr.msra.gmra.mrb[0].mxu0 %v35_v26  ;;  %281 = vmatmul.mubr.f32.vlgmr.msra.gmra.mrb[0].mxu1 %v39_v27 }
  0x25   :  { %277 = vmatprep.mubr.f32.mxu0 %v36_v28  ;;  %283 = vmatprep.mubr.f32.mxu1 %v40_v29 }
  0x28   :  { %278 = vmatmul.mubr.f32.gmra.mrb[2].mxu0 %v37_v30  ;;  %284 = vmatmul.mubr.f32.gmra.mrb[2].mxu1 %v41_v31 }
  0xf7   :  { %v276_v33 = vpop.f32.mrb[0].mxu0  ;;  %v282_v34 = vpop.f32.mrb[0].mxu1 }
  0xf8   :  { %v198_v35 = vadd.f32 %v276_v33, %v217_v32  ;;  %v202_v36 = vadd.f32 %v282_v34, %v217_v32  ;;  %v124_v37 = vpop.f32.mrb[1].mxu0  ;;  %v144_v38 = vpop.f32.mrb[1].mxu1 }
  0xf9   :  { %v197_v39 = vadd.f32 %v217_v32, %v124_v37  ;;  %v201_v40 = vadd.f32 %v217_v32, %v144_v38 }
  0xfa   :  { %206 = vst [vmem:[%s456_s3 + $0x8] sm:$0xff] %v198_v35  ;;  %210 = vst [vmem:[%s456_s3 + $0x28] sm:$0xff] %v202_v36 }
  0xfb   :  { %205 = vst [vmem:[%s456_s3] sm:$0xff] %v197_v39  ;;  %209 = vst [vmem:[%s456_s3 + $0x20] sm:$0xff] %v201_v40  ;;  %v279_v41 = vpop.f32.mrb[2].mxu0  ;;  %v285_v42 = vpop.f32.mrb[2].mxu1 }
  0xfc   :  { %v200_v43 = vadd.f32 %v279_v41, %v217_v32  ;;  %v204_v44 = vadd.f32 %v285_v42, %v217_v32  ;;  %v134_v45 = vpop.f32.mrb[3].mxu0  ;;  %v154_v46 = vpop.f32.mrb[3].mxu1 }
  0xfd   :  { %v199_v47 = vadd.f32 %v217_v32, %v134_v45  ;;  %v203_v48 = vadd.f32 %v217_v32, %v154_v46 }
  0xfe   :  { %208 = vst [vmem:[%s456_s3 + $0x18] sm:$0xff] %v200_v43  ;;  %212 = vst [vmem:[%s456_s3 + $0x38] sm:$0xff] %v204_v44 }
  0xff   :  { %207 = vst [vmem:[%s456_s3 + $0x10] sm:$0xff] %v199_v47  ;;  %211 = vst [vmem:[%s456_s3 + $0x30] sm:$0xff] %v203_v48 }

// kernel: encoder_rnn_forward.3
= control target key start
LH: loop header
LB: loop body
LE: loop exit
PB: predicated region body
PF: predicated region fallthrough
CT: control target
= control target key end

     0   :  { %v2024_v0 = vmov 0.0|0.0   ;;  %vm2025_vm0 = vmmov 0   ;;  %v2026_v4 = vmov 0.0   ;;  %vm184_vm1 = vcmask 1041409   ;;  %s2724_s1 = inlined_call_operand.vmem [shape: f32[128,128], index: 1, kind: input, shape index: {}]   ;;  %s2725_s0 = inlined_call_operand.vmem [shape: f32[8,8,128], index: 0, kind: input, shape index: {}]   ;;  %s2726_s2 = inlined_call_operand.vmem [shape: f32[8,8,128], index: 2, kind: output, shape index: {}]  }
   0x1   :  { %1701 = vmatprep.subr.bf16.mxu0 %v2024_v0  ;;  %v25_v1 = vld [vmem:[%s2724_s1] sm:$0xff]  ;;  %v26_v2 = vld [vmem:[%s2724_s1 + $0x8] sm:$0xff]  ;;  %v27_v3 = vld [vmem:[%s2724_s1 + $0x10] sm:$0xff]  ;;  %1453 = vmatprep.mubr.msk.f32.mxu0 %vm2025_vm0, %v2026_v4  ;;  %vm187_vm2 = vcmask 1042434   ;;  %vm190_vm3 = vcmask 1043459   ;;  %vm193_vm4 = vcmask 1044484  }
   0x2   :  { %v2054_v5 = vpack.c.bf16 %v26_v2, %v25_v1  ;;  %v28_v6 = vld [vmem:[%s2724_s1 + $0x18] sm:$0xff]  ;;  %1725 = vmatprep.subr.bf16.mxu1 %v2024_v0  ;;  %1488 = vmatprep.mubr.msk.f32.mxu1 %vm2025_vm0, %v2026_v4  ;;  %v29_v8 = vld [vmem:[%s2724_s1 + $0x20] sm:$0xff]  ;;  %v30_v9 = vld [vmem:[%s2724_s1 + $0x28] sm:$0xff]  ;;  %vm196_vm5 = vcmask 1045509   ;;  %vm199_vm6 = vcmask 1046534   ;;  %vm202_vm7 = vcmask 1047559  }
   0x3   :  { %v2063_v7 = vpack.c.bf16 %v28_v6, %v27_v3  ;;  %v2075_v10 = vpack.c.bf16 %v30_v9, %v29_v8  ;;  %v31_v11 = vld [vmem:[%s2724_s1 + $0x30] sm:$0xff]  ;;  %v32_v12 = vld [vmem:[%s2724_s1 + $0x38] sm:$0xff]  ;;  %v33_v14 = vld [vmem:[%s2724_s1 + $0x40] sm:$0xff] }
   0x4   :  { %1703 = vmatpush3.bf16.msra.mxu0 %v2054_v5  ;;  %1727 = vmatpush3.bf16.msra.mxu1 %v2054_v5  ;;  %v2087_v13 = vpack.c.bf16 %v32_v12, %v31_v11  ;;  %v34_v15 = vld [vmem:[%s2724_s1 + $0x48] sm:$0xff]  ;;  %v35_v17 = vld [vmem:[%s2724_s1 + $0x50] sm:$0xff]  ;;  %v36_v18 = vld [vmem:[%s2724_s1 + $0x58] sm:$0xff] }
   0x5   :  { %1704 = vmatprep.subr.bf16.mxu0 %v2024_v0  ;;  %1728 = vmatprep.subr.bf16.mxu1 %v2024_v0  ;;  %v2099_v16 = vpack.c.bf16 %v34_v15, %v33_v14  ;;  %v2111_v19 = vpack.c.bf16 %v36_v18, %v35_v17  ;;  %v37_v20 = vld [vmem:[%s2724_s1 + $0x60] sm:$0xff]  ;;  %v38_v21 = vld [vmem:[%s2724_s1 + $0x68] sm:$0xff]  ;;  %v39_v23 = vld [vmem:[%s2724_s1 + $0x70] sm:$0xff] }
   0x6   :  { %v2123_v22 = vpack.c.bf16 %v38_v21, %v37_v20  ;;  %v40_v24 = vld [vmem:[%s2724_s1 + $0x78] sm:$0xff]  ;;  %v17_v26 = vld [vmem:[%s2725_s0] sm:$0x1]  ;;  %v18_v27 = vld [vmem:[%s2725_s0 + $0x8] sm:$0x1] }
   0x7   :  { %v2135_v25 = vpack.c.bf16 %v40_v24, %v39_v23  ;;  %v19_v28 = vld [vmem:[%s2725_s0 + $0x10] sm:$0x1]  ;;  %v20_v29 = vld [vmem:[%s2725_s0 + $0x18] sm:$0x1]  ;;  %v21_v30 = vld [vmem:[%s2725_s0 + $0x20] sm:$0x1] }
   0x8   :  { %1706 = vmatpush3.bf16.msra.mxu0 %v2063_v7  ;;  %1730 = vmatpush3.bf16.msra.mxu1 %v2063_v7  ;;  %v22_v37 = vld [vmem:[%s2725_s0 + $0x28] sm:$0x1]  ;;  %v23_v44 = vld [vmem:[%s2725_s0 + $0x30] sm:$0x1]  ;;  %v24_v47 = vld [vmem:[%s2725_s0 + $0x38] sm:$0x1] }
   0x9   :  { %1707 = vmatprep.subr.bf16.mxu0 %v2024_v0  ;;  %1731 = vmatprep.subr.bf16.mxu1 %v2024_v0  ;;  %v151_v15 = vld [vmem:[%s2725_s0 + $0x1] sm:$0x1]  ;;  %v152_v17 = vld [vmem:[%s2725_s0 + $0x9] sm:$0x1]  ;;  %v153_v18 = vld [vmem:[%s2725_s0 + $0x11] sm:$0x1] }
   0xa   :  { %v154_v20 = vld [vmem:[%s2725_s0 + $0x19] sm:$0x1]  ;;  %v155_v21 = vld [vmem:[%s2725_s0 + $0x21] sm:$0x1] }
   0xc   :  { %1709 = vmatpush3.bf16.msra.mxu0 %v2075_v10  ;;  %1733 = vmatpush3.bf16.msra.mxu1 %v2075_v10 }
   0xd   :  { %1710 = vmatprep.subr.bf16.mxu0 %v2024_v0  ;;  %1734 = vmatprep.subr.bf16.mxu1 %v2024_v0 }
  0x10   :  { %1712 = vmatpush3.bf16.msra.mxu0 %v2087_v13  ;;  %1736 = vmatpush3.bf16.msra.mxu1 %v2087_v13 }
  0x11   :  { %1713 = vmatprep.subr.bf16.mxu0 %v2024_v0  ;;  %1737 = vmatprep.subr.bf16.mxu1 %v2024_v0 }
  0x14   :  { %1715 = vmatpush3.bf16.msra.mxu0 %v2099_v16  ;;  %1739 = vmatpush3.bf16.msra.mxu1 %v2099_v16 }
  0x15   :  { %1716 = vmatprep.subr.bf16.mxu0 %v2024_v0  ;;  %1740 = vmatprep.subr.bf16.mxu1 %v2024_v0 }
  0x18   :  { %1718 = vmatpush3.bf16.msra.mxu0 %v2111_v19  ;;  %1742 = vmatpush3.bf16.msra.mxu1 %v2111_v19 }
  0x19   :  { %1719 = vmatprep.subr.bf16.mxu0 %v2024_v0  ;;  %1743 = vmatprep.subr.bf16.mxu1 %v2024_v0 }
  0x1c   :  { %1721 = vmatpush3.bf16.msra.mxu0 %v2123_v22  ;;  %1745 = vmatpush3.bf16.msra.mxu1 %v2123_v22 }
  0x1d   :  { %1722 = vmatprep.subr.bf16.mxu0 %v2024_v0  ;;  %1746 = vmatprep.subr.bf16.mxu1 %v2024_v0 }
  0x20   :  { %1724 = vmatpush3.bf16.msra.mxu0 %v2135_v25  ;;  %1748 = vmatpush3.bf16.msra.mxu1 %v2135_v25 }
  0x21   :  { %1749 = vmatprep.subr.bf16.mxu0 %v2024_v0  ;;  %1773 = vmatprep.subr.bf16.mxu1 %v2024_v0 }
  0x23   :  { %1454 = vmatmul.mubr.f32.vlgmr.msra.gmra.mrb[0].mxu0 %v2026_v4 }
  0x24   :  { %1751 = vmatpush3.bf16.msra.mxu0 %v2054_v5  ;;  %1523 = vmatprep.mubr.msk.f32.mxu0 %vm2025_vm0, %v2026_v4 }
  0x25   :  { %1752 = vmatprep.subr.bf16.mxu0 %v2024_v0 }
  0x28   :  { %1754 = vmatpush3.bf16.msra.mxu0 %v2063_v7 }
  0x29   :  { %1755 = vmatprep.subr.bf16.mxu0 %v2024_v0 }
  0x2c   :  { %1757 = vmatpush3.bf16.msra.mxu0 %v2075_v10 }
  0x2d   :  { %1758 = vmatprep.subr.bf16.mxu0 %v2024_v0 }
  0x30   :  { %1760 = vmatpush3.bf16.msra.mxu0 %v2087_v13 }
  0x31   :  { %1761 = vmatprep.subr.bf16.mxu0 %v2024_v0 }
  0x34   :  { %1763 = vmatpush3.bf16.msra.mxu0 %v2099_v16 }
  0x35   :  { %1764 = vmatprep.subr.bf16.mxu0 %v2024_v0 }
  0x38   :  { %1766 = vmatpush3.bf16.msra.mxu0 %v2111_v19 }
  0x39   :  { %1767 = vmatprep.subr.bf16.mxu0 %v2024_v0 }
  0x3c   :  { %1769 = vmatpush3.bf16.msra.mxu0 %v2123_v22 }
  0x3d   :  { %1770 = vmatprep.subr.bf16.mxu0 %v2024_v0 }
  0x40   :  { %1772 = vmatpush3.bf16.msra.mxu0 %v2135_v25 }
  0x41   :  { %1797 = vmatprep.subr.bf16.mxu0 %v2024_v0 }
  0xf6   :  { %v107_v31 = vpop.f32.mrb[0].mxu0 }
  0xf7   :  { %v112_v32 = vrot.slane %v107_v31, 1  ;;  %v113_v33 = vrot.slane %v107_v31, 2  ;;  %v114_v34 = vrot.slane %v107_v31, 3  ;;  %v115_v35 = vrot.slane %v107_v31, 4  ;;  %v1455_v36 = vpop.f32.mrb[1].mxu0 }
  0xf8   :  { %v116_v38 = vrot.slane %v107_v31, 5  ;;  %v117_v39 = vrot.slane %v107_v31, 6  ;;  %v127_v40 = vadd.f32 %v107_v31, %v17_v26  ;;  %v118_v45 = vrot.slane %v107_v31, 7 }
  0xf9   :  { %v128_v41 = vadd.f32 %v112_v32, %v18_v27  ;;  %v129_v42 = vadd.f32 %v113_v33, %v19_v28  ;;  %v130_v43 = vadd.f32 %v114_v34, %v20_v29  ;;  %v131_v46 = vadd.f32 %v115_v35, %v21_v30  ;;  %v156_v30 = vld [vmem:[%s2725_s0 + $0x29] sm:$0x1] }
  0xfa   :  { %1896 = vtanh.f32 %v127_v40  ;;  %v132_v48 = vadd.f32 %v116_v38, %v22_v37  ;;  %v133_v49 = vadd.f32 %v117_v39, %v23_v44  ;;  %v134_v50 = vadd.f32 %v118_v45, %v24_v47  ;;  %v157_v38 = vld [vmem:[%s2725_s0 + $0x31] sm:$0x1]  ;;  %v158_v40 = vld [vmem:[%s2725_s0 + $0x39] sm:$0x1] }
  0xfb   :  { %1898 = vtanh.f32 %v128_v41 }
  0xfc   :  { %1900 = vtanh.f32 %v129_v42 }
  0xfd   :  { %1902 = vtanh.f32 %v130_v43 }
  0xfe   :  { %1904 = vtanh.f32 %v131_v46 }
  0xff   :  { %1906 = vtanh.f32 %v132_v48 }
 0x100   :  { %1908 = vtanh.f32 %v133_v49 }
 0x101   :  { %1910 = vtanh.f32 %v134_v50 }
 0x104   :  { %v1897_v51 = vpop.eup %1896 }
 0x105   :  { %v1899_v52 = vpop.eup %1898  ;;  %143 = vst [vmem:[%s2726_s2] sm:$0x1] %v1897_v51 }
 0x106   :  { %v1901_v53 = vpop.eup %1900  ;;  %144 = vst [vmem:[%s2726_s2 + $0x8] sm:$0x1] %v1899_v52  ;;  %v183_v54 = vrot.slane %v1899_v52, 7 }
 0x107   :  { %v1903_v55 = vpop.eup %1902  ;;  %145 = vst [vmem:[%s2726_s2 + $0x10] sm:$0x1] %v1901_v53  ;;  %v186_v56 = vrot.slane %v1901_v53, 6 }
 0x108   :  { %v1905_v57 = vpop.eup %1904  ;;  %146 = vst [vmem:[%s2726_s2 + $0x18] sm:$0x1] %v1903_v55  ;;  %v185_v58 = vsel %vm184_vm1, %v183_v54, %v1897_v51  ;;  %v189_v59 = vrot.slane %v1903_v55, 5 }
 0x109   :  { %v1907_v60 = vpop.eup %1906  ;;  %147 = vst [vmem:[%s2726_s2 + $0x20] sm:$0x1] %v1905_v57  ;;  %v188_v61 = vsel %vm187_vm2, %v186_v56, %v185_v58  ;;  %v192_v62 = vrot.slane %v1905_v57, 4 }
 0x10a   :  { %v1909_v63 = vpop.eup %1908  ;;  %148 = vst [vmem:[%s2726_s2 + $0x28] sm:$0x1] %v1907_v60  ;;  %v191_v1 = vsel %vm190_vm3, %v189_v59, %v188_v61  ;;  %v195_v2 = vrot.slane %v1907_v60, 3 }
 0x10b   :  { %v1911_v3 = vpop.eup %1910  ;;  %149 = vst [vmem:[%s2726_s2 + $0x30] sm:$0x1] %v1909_v63  ;;  %v194_v6 = vsel %vm193_vm4, %v192_v62, %v191_v1  ;;  %v198_v8 = vrot.slane %v1909_v63, 2 }
 0x10c   :  { %150 = vst [vmem:[%s2726_s2 + $0x38] sm:$0x1] %v1911_v3  ;;  %v197_v9 = vsel %vm196_vm5, %v195_v2, %v194_v6  ;;  %v201_v11 = vrot.slane %v1911_v3, 1  ;;  %v315_v3 = vld [vmem:[%s2725_s0 + $0x2] sm:$0x1] }
 0x10d   :  { %v200_v12 = vsel %vm199_vm6, %v198_v8, %v197_v9  ;;  %v316_v6 = vld [vmem:[%s2725_s0 + $0xa] sm:$0x1]  ;;  %v317_v8 = vld [vmem:[%s2725_s0 + $0x12] sm:$0x1]  ;;  %v318_v9 = vld [vmem:[%s2725_s0 + $0x1a] sm:$0x1] }
 0x10e   :  { %v203_v14 = vsel %vm202_vm7, %v201_v11, %v200_v12  ;;  %v319_v11 = vld [vmem:[%s2725_s0 + $0x22] sm:$0x1] }
 0x10f   :  { %1489 = vmatmul.mubr.f32.vlgmr.msra.gmra.mrb[0].mxu1 %v203_v14 }
 0x110   :  { %1775 = vmatpush3.bf16.msra.mxu1 %v2054_v5  ;;  %1558 = vmatprep.mubr.msk.f32.mxu1 %vm2025_vm0, %v2026_v4 }
 0x111   :  { %1776 = vmatprep.subr.bf16.mxu1 %v2024_v0 }
 0x114   :  { %1778 = vmatpush3.bf16.msra.mxu1 %v2063_v7 }
 0x115   :  { %1779 = vmatprep.subr.bf16.mxu1 %v2024_v0 }
 0x118   :  { %1781 = vmatpush3.bf16.msra.mxu1 %v2075_v10 }
 0x119   :  { %1782 = vmatprep.subr.bf16.mxu1 %v2024_v0 }
 0x11c   :  { %1784 = vmatpush3.bf16.msra.mxu1 %v2087_v13 }
 0x11d   :  { %1785 = vmatprep.subr.bf16.mxu1 %v2024_v0 }
 0x120   :  { %1787 = vmatpush3.bf16.msra.mxu1 %v2099_v16 }
 0x121   :  { %1788 = vmatprep.subr.bf16.mxu1 %v2024_v0 }
 0x124   :  { %1790 = vmatpush3.bf16.msra.mxu1 %v2111_v19 }
 0x125   :  { %1791 = vmatprep.subr.bf16.mxu1 %v2024_v0 }
 0x128   :  { %1793 = vmatpush3.bf16.msra.mxu1 %v2123_v22 }
 0x129   :  { %1794 = vmatprep.subr.bf16.mxu1 %v2024_v0 }
 0x12c   :  { %1796 = vmatpush3.bf16.msra.mxu1 %v2135_v25 }
 0x12d   :  { %1821 = vmatprep.subr.bf16.mxu1 %v2024_v0 }
 0x1e2   :  { %v271_v23 = vpop.f32.mrb[0].mxu1 }
 0x1e3   :  { %v276_v24 = vrot.slane %v271_v23, 1  ;;  %v277_v26 = vrot.slane %v271_v23, 2  ;;  %v278_v27 = vrot.slane %v271_v23, 3  ;;  %v279_v28 = vrot.slane %v271_v23, 4  ;;  %v1490_v29 = vpop.f32.mrb[1].mxu1 }
 0x1e4   :  { %v280_v31 = vrot.slane %v271_v23, 5  ;;  %v281_v32 = vrot.slane %v271_v23, 6  ;;  %v291_v33 = vadd.f32 %v271_v23, %v151_v15  ;;  %v282_v34 = vrot.slane %v271_v23, 7 }
 0x1e5   :  { %v292_v35 = vadd.f32 %v276_v24, %v152_v17  ;;  %v293_v36 = vadd.f32 %v277_v26, %v153_v18  ;;  %v294_v37 = vadd.f32 %v278_v27, %v154_v20  ;;  %v295_v39 = vadd.f32 %v279_v28, %v155_v21  ;;  %v320_v21 = vld [vmem:[%s2725_s0 + $0x2a] sm:$0x1] }
 0x1e6   :  { %1912 = vtanh.f32 %v291_v33  ;;  %v296_v41 = vadd.f32 %v280_v31, %v156_v30  ;;  %v297_v42 = vadd.f32 %v281_v32, %v157_v38  ;;  %v298_v43 = vadd.f32 %v282_v34, %v158_v40  ;;  %v321_v31 = vld [vmem:[%s2725_s0 + $0x32] sm:$0x1]  ;;  %v322_v33 = vld [vmem:[%s2725_s0 + $0x3a] sm:$0x1] }
 0x1e7   :  { %1914 = vtanh.f32 %v292_v35 }
 0x1e8   :  { %1916 = vtanh.f32 %v293_v36 }
 0x1e9   :  { %1918 = vtanh.f32 %v294_v37 }
 0x1ea   :  { %1920 = vtanh.f32 %v295_v39 }
 0x1eb   :  { %1922 = vtanh.f32 %v296_v41 }
 0x1ec   :  { %1924 = vtanh.f32 %v297_v42 }
 0x1ed   :  { %1926 = vtanh.f32 %v298_v43 }
 0x1f0   :  { %v1913_v44 = vpop.eup %1912 }
 0x1f1   :  { %v1915_v45 = vpop.eup %1914  ;;  %307 = vst [vmem:[%s2726_s2 + $0x1] sm:$0x1] %v1913_v44 }
 0x1f2   :  { %v1917_v46 = vpop.eup %1916  ;;  %308 = vst [vmem:[%s2726_s2 + $0x9] sm:$0x1] %v1915_v45  ;;  %v347_v47 = vrot.slane %v1915_v45, 7 }
 0x1f3   :  { %v1919_v48 = vpop.eup %1918  ;;  %309 = vst [vmem:[%s2726_s2 + $0x11] sm:$0x1] %v1917_v46  ;;  %v349_v49 = vrot.slane %v1917_v46, 6 }
 0x1f4   :  { %v1921_v50 = vpop.eup %1920  ;;  %310 = vst [vmem:[%s2726_s2 + $0x19] sm:$0x1] %v1919_v48  ;;  %v348_v51 = vsel %vm184_vm1, %v347_v47, %v1913_v44  ;;  %v351_v52 = vrot.slane %v1919_v48, 5 }
 0x1f5   :  { %v1923_v53 = vpop.eup %1922  ;;  %311 = vst [vmem:[%s2726_s2 + $0x21] sm:$0x1] %v1921_v50  ;;  %v350_v54 = vsel %vm187_vm2, %v349_v49, %v348_v51  ;;  %v353_v55 = vrot.slane %v1921_v50, 4 }
 0x1f6   :  { %v1925_v56 = vpop.eup %1924  ;;  %312 = vst [vmem:[%s2726_s2 + $0x29] sm:$0x1] %v1923_v53  ;;  %v352_v57 = vsel %vm190_vm3, %v351_v52, %v350_v54  ;;  %v355_v58 = vrot.slane %v1923_v53, 3 }
 0x1f7   :  { %v1927_v59 = vpop.eup %1926  ;;  %313 = vst [vmem:[%s2726_s2 + $0x31] sm:$0x1] %v1925_v56  ;;  %v354_v60 = vsel %vm193_vm4, %v353_v55, %v352_v57  ;;  %v357_v61 = vrot.slane %v1925_v56, 2 }
 0x1f8   :  { %314 = vst [vmem:[%s2726_s2 + $0x39] sm:$0x1] %v1927_v59  ;;  %v356_v62 = vsel %vm196_vm5, %v355_v58, %v354_v60  ;;  %v359_v63 = vrot.slane %v1927_v59, 1 }
 0x1f9   :  { %v358_v1 = vsel %vm199_vm6, %v357_v61, %v356_v62  ;;  %v477_v62 = vld [vmem:[%s2725_s0 + $0x2b] sm:$0x1] }
 0x1fa   :  { %v360_v2 = vsel %vm202_vm7, %v359_v63, %v358_v1 }
 0x1fb   :  { %1524 = vmatmul.mubr.f32.vlgmr.msra.gmra.mrb[2].mxu0 %v360_v2 }
 0x1fc   :  { %1799 = vmatpush3.bf16.msra.mxu0 %v2054_v5  ;;  %1593 = vmatprep.mubr.msk.f32.mxu0 %vm2025_vm0, %v2026_v4 }
 0x1fd   :  { %1800 = vmatprep.subr.bf16.mxu0 %v2024_v0 }
 0x200   :  { %1802 = vmatpush3.bf16.msra.mxu0 %v2063_v7 }
 0x201   :  { %1803 = vmatprep.subr.bf16.mxu0 %v2024_v0 }
 0x204   :  { %1805 = vmatpush3.bf16.msra.mxu0 %v2075_v10 }
 0x205   :  { %1806 = vmatprep.subr.bf16.mxu0 %v2024_v0 }
 0x208   :  { %1808 = vmatpush3.bf16.msra.mxu0 %v2087_v13 }
 0x209   :  { %1809 = vmatprep.subr.bf16.mxu0 %v2024_v0 }
 0x20c   :  { %1811 = vmatpush3.bf16.msra.mxu0 %v2099_v16 }
 0x20d   :  { %1812 = vmatprep.subr.bf16.mxu0 %v2024_v0 }
 0x210   :  { %1814 = vmatpush3.bf16.msra.mxu0 %v2111_v19 }
 0x211   :  { %1815 = vmatprep.subr.bf16.mxu0 %v2024_v0 }
 0x214   :  { %1817 = vmatpush3.bf16.msra.mxu0 %v2123_v22 }
 0x215   :  { %1818 = vmatprep.subr.bf16.mxu0 %v2024_v0 }
 0x218   :  { %1820 = vmatpush3.bf16.msra.mxu0 %v2135_v25 }
 0x219   :  { %1845 = vmatprep.subr.bf16.mxu0 %v2024_v0 }
 0x2ce   :  { %v428_v12 = vpop.f32.mrb[2].mxu0 }
 0x2cf   :  { %v433_v14 = vrot.slane %v428_v12, 1  ;;  %v434_v15 = vrot.slane %v428_v12, 2  ;;  %v435_v17 = vrot.slane %v428_v12, 3  ;;  %v436_v18 = vrot.slane %v428_v12, 4  ;;  %v1525_v20 = vpop.f32.mrb[3].mxu0 }
 0x2d0   :  { %v437_v23 = vrot.slane %v428_v12, 5  ;;  %v438_v24 = vrot.slane %v428_v12, 6  ;;  %v448_v26 = vadd.f32 %v428_v12, %v315_v3  ;;  %v439_v27 = vrot.slane %v428_v12, 7 }
 0x2d1   :  { %v449_v28 = vadd.f32 %v433_v14, %v316_v6  ;;  %v450_v29 = vadd.f32 %v434_v15, %v317_v8  ;;  %v451_v30 = vadd.f32 %v435_v17, %v318_v9  ;;  %v452_v32 = vadd.f32 %v436_v18, %v319_v11  ;;  %v478_v11 = vld [vmem:[%s2725_s0 + $0x33] sm:$0x1]  ;;  %v479_v14 = vld [vmem:[%s2725_s0 + $0x3b] sm:$0x1] }
 0x2d2   :  { %1928 = vtanh.f32 %v448_v26  ;;  %v453_v34 = vadd.f32 %v437_v23, %v320_v21  ;;  %v454_v35 = vadd.f32 %v438_v24, %v321_v31  ;;  %v455_v36 = vadd.f32 %v439_v27, %v322_v33 }
 0x2d3   :  { %1930 = vtanh.f32 %v449_v28 }
 0x2d4   :  { %1932 = vtanh.f32 %v450_v29 }
 0x2d5   :  { %1934 = vtanh.f32 %v451_v30 }
 0x2d6   :  { %1936 = vtanh.f32 %v452_v32 }
 0x2d7   :  { %1938 = vtanh.f32 %v453_v34 }
 0x2d8   :  { %1940 = vtanh.f32 %v454_v35 }
 0x2d9   :  { %1942 = vtanh.f32 %v455_v36 }
 0x2dc   :  { %v1929_v37 = vpop.eup %1928 }
 0x2dd   :  { %v1931_v38 = vpop.eup %1930  ;;  %464 = vst [vmem:[%s2726_s2 + $0x2] sm:$0x1] %v1929_v37 }
 0x2de   :  { %v1933_v39 = vpop.eup %1932  ;;  %465 = vst [vmem:[%s2726_s2 + $0xa] sm:$0x1] %v1931_v38  ;;  %v504_v40 = vrot.slane %v1931_v38, 7 }
 0x2df   :  { %v1935_v41 = vpop.eup %1934  ;;  %466 = vst [vmem:[%s2726_s2 + $0x12] sm:$0x1] %v1933_v39  ;;  %v506_v42 = vrot.slane %v1933_v39, 6 }
 0x2e0   :  { %v1937_v43 = vpop.eup %1936  ;;  %467 = vst [vmem:[%s2726_s2 + $0x1a] sm:$0x1] %v1935_v41  ;;  %v505_v44 = vsel %vm184_vm1, %v504_v40, %v1929_v37  ;;  %v508_v45 = vrot.slane %v1935_v41, 5 }
 0x2e1   :  { %v1939_v46 = vpop.eup %1938  ;;  %468 = vst [vmem:[%s2726_s2 + $0x22] sm:$0x1] %v1937_v43  ;;  %v507_v47 = vsel %vm187_vm2, %v506_v42, %v505_v44  ;;  %v510_v48 = vrot.slane %v1937_v43, 4  ;;  %v951_v44 = vld [vmem:[%s2724_s1] sm:$0xff] }
 0x2e2   :  { %v1941_v49 = vpop.eup %1940  ;;  %469 = vst [vmem:[%s2726_s2 + $0x2a] sm:$0x1] %v1939_v46  ;;  %v509_v50 = vsel %vm190_vm3, %v508_v45, %v507_v47  ;;  %v512_v51 = vrot.slane %v1939_v46, 3  ;;  %v952_v45 = vld [vmem:[%s2724_s1 + $0x8] sm:$0xff]  ;;  %v953_v46 = vld [vmem:[%s2724_s1 + $0x10] sm:$0xff] }
 0x2e3   :  { %v1943_v52 = vpop.eup %1942  ;;  %470 = vst [vmem:[%s2726_s2 + $0x32] sm:$0x1] %v1941_v49  ;;  %v511_v53 = vsel %vm193_vm4, %v510_v48, %v509_v50  ;;  %v514_v54 = vrot.slane %v1941_v49, 2  ;;  %v2448_v47 = vpack.c.bf16 %v952_v45, %v951_v44  ;;  %v954_v48 = vld [vmem:[%s2724_s1 + $0x18] sm:$0xff]  ;;  %v629_v50 = vld [vmem:[%s2725_s0 + $0x4] sm:$0x1] }
 0x2e4   :  { %471 = vst [vmem:[%s2726_s2 + $0x3a] sm:$0x1] %v1943_v52  ;;  %v513_v55 = vsel %vm196_vm5, %v512_v51, %v511_v53  ;;  %v516_v56 = vrot.slane %v1943_v52, 1  ;;  %v2454_v49 = vpack.c.bf16 %v954_v48, %v953_v46  ;;  %v630_v51 = vld [vmem:[%s2725_s0 + $0xc] sm:$0x1]  ;;  %v962_v44 = vld [vmem:[%s2724_s1 + $0x58] sm:$0xff] }
 0x2e5   :  { %v515_v57 = vsel %vm199_vm6, %v514_v54, %v513_v55  ;;  %v631_v52 = vld [vmem:[%s2725_s0 + $0x14] sm:$0x1]  ;;  %v632_v53 = vld [vmem:[%s2725_s0 + $0x1c] sm:$0x1]  ;;  %v633_v54 = vld [vmem:[%s2725_s0 + $0x24] sm:$0x1] }
 0x2e6   :  { %v517_v58 = vsel %vm202_vm7, %v516_v56, %v515_v57  ;;  %v963_v46 = vld [vmem:[%s2724_s1 + $0x60] sm:$0xff] }
 0x2e7   :  { %1559 = vmatmul.mubr.f32.vlgmr.msra.gmra.mrb[2].mxu1 %v517_v58 }
 0x2e8   :  { %1823 = vmatpush3.bf16.msra.mxu1 %v2054_v5  ;;  %1628 = vmatprep.mubr.msk.f32.mxu1 %vm2025_vm0, %v2026_v4  ;;  %v472_v5 = vld [vmem:[%s2725_s0 + $0x3] sm:$0x1] }
 0x2e9   :  { %1824 = vmatprep.subr.bf16.mxu1 %v2024_v0 }
 0x2ec   :  { %1826 = vmatpush3.bf16.msra.mxu1 %v2063_v7  ;;  %v473_v7 = vld [vmem:[%s2725_s0 + $0xb] sm:$0x1] }
 0x2ed   :  { %1827 = vmatprep.subr.bf16.mxu1 %v2024_v0 }
 0x2f0   :  { %1829 = vmatpush3.bf16.msra.mxu1 %v2075_v10  ;;  %v474_v10 = vld [vmem:[%s2725_s0 + $0x13] sm:$0x1] }
 0x2f1   :  { %1830 = vmatprep.subr.bf16.mxu1 %v2024_v0 }
 0x2f4   :  { %1832 = vmatpush3.bf16.msra.mxu1 %v2087_v13  ;;  %v475_v13 = vld [vmem:[%s2725_s0 + $0x1b] sm:$0x1] }
 0x2f5   :  { %1833 = vmatprep.subr.bf16.mxu1 %v2024_v0 }
 0x2f8   :  { %1835 = vmatpush3.bf16.msra.mxu1 %v2099_v16  ;;  %v476_v16 = vld [vmem:[%s2725_s0 + $0x23] sm:$0x1] }
 0x2f9   :  { %1836 = vmatprep.subr.bf16.mxu1 %v2024_v0 }
 0x2fc   :  { %1838 = vmatpush3.bf16.msra.mxu1 %v2111_v19 }
 0x2fd   :  { %1839 = vmatprep.subr.bf16.mxu1 %v2024_v0 }
 0x300   :  { %1841 = vmatpush3.bf16.msra.mxu1 %v2123_v22 }
 0x301   :  { %1842 = vmatprep.subr.bf16.mxu1 %v2024_v0 }
 0x304   :  { %1844 = vmatpush3.bf16.msra.mxu1 %v2135_v25 }
 0x305   :  { %1869 = vmatprep.subr.bf16.mxu1 %v2024_v0 }
 0x3ba   :  { %v585_v19 = vpop.f32.mrb[2].mxu1 }
 0x3bb   :  { %v590_v22 = vrot.slane %v585_v19, 1  ;;  %v591_v25 = vrot.slane %v585_v19, 2  ;;  %v592_v59 = vrot.slane %v585_v19, 3  ;;  %v593_v60 = vrot.slane %v585_v19, 4  ;;  %v1560_v61 = vpop.f32.mrb[3].mxu1 }
 0x3bc   :  { %v594_v63 = vrot.slane %v585_v19, 5  ;;  %v595_v1 = vrot.slane %v585_v19, 6  ;;  %v605_v2 = vadd.f32 %v585_v19, %v472_v5  ;;  %v596_v3 = vrot.slane %v585_v19, 7  ;;  %v635_v61 = vld [vmem:[%s2725_s0 + $0x34] sm:$0x1] }
 0x3bd   :  { %v606_v6 = vadd.f32 %v590_v22, %v473_v7  ;;  %v607_v8 = vadd.f32 %v591_v25, %v474_v10  ;;  %v608_v9 = vadd.f32 %v592_v59, %v475_v13  ;;  %v609_v12 = vadd.f32 %v593_v60, %v476_v16  ;;  %v634_v10 = vld [vmem:[%s2725_s0 + $0x2c] sm:$0x1] }
 0x3be   :  { %1944 = vtanh.f32 %v605_v2  ;;  %v610_v15 = vadd.f32 %v594_v63, %v477_v62  ;;  %v611_v17 = vadd.f32 %v595_v1, %v478_v11  ;;  %v612_v18 = vadd.f32 %v596_v3, %v479_v14  ;;  %v636_v63 = vld [vmem:[%s2725_s0 + $0x3c] sm:$0x1] }
 0x3bf   :  { %1946 = vtanh.f32 %v606_v6 }
 0x3c0   :  { %1948 = vtanh.f32 %v607_v8 }
 0x3c1   :  { %1950 = vtanh.f32 %v608_v9 }
 0x3c2   :  { %1952 = vtanh.f32 %v609_v12 }
 0x3c3   :  { %1954 = vtanh.f32 %v610_v15 }
 0x3c4   :  { %1956 = vtanh.f32 %v611_v17 }
 0x3c5   :  { %1958 = vtanh.f32 %v612_v18 }
 0x3c8   :  { %v1945_v20 = vpop.eup %1944 }
 0x3c9   :  { %v1947_v21 = vpop.eup %1946  ;;  %621 = vst [vmem:[%s2726_s2 + $0x3] sm:$0x1] %v1945_v20 }
 0x3ca   :  { %v1949_v23 = vpop.eup %1948  ;;  %622 = vst [vmem:[%s2726_s2 + $0xb] sm:$0x1] %v1947_v21  ;;  %v661_v24 = vrot.slane %v1947_v21, 7 }
 0x3cb   :  { %v1951_v26 = vpop.eup %1950  ;;  %623 = vst [vmem:[%s2726_s2 + $0x13] sm:$0x1] %v1949_v23  ;;  %v663_v27 = vrot.slane %v1949_v23, 6 }
 0x3cc   :  { %v1953_v28 = vpop.eup %1952  ;;  %624 = vst [vmem:[%s2726_s2 + $0x1b] sm:$0x1] %v1951_v26  ;;  %v662_v29 = vsel %vm184_vm1, %v661_v24, %v1945_v20  ;;  %v665_v30 = vrot.slane %v1951_v26, 5 }
 0x3cd   :  { %v1955_v31 = vpop.eup %1954  ;;  %625 = vst [vmem:[%s2726_s2 + $0x23] sm:$0x1] %v1953_v28  ;;  %v664_v32 = vsel %vm187_vm2, %v663_v27, %v662_v29  ;;  %v667_v33 = vrot.slane %v1953_v28, 4 }
 0x3ce   :  { %v1957_v34 = vpop.eup %1956  ;;  %626 = vst [vmem:[%s2726_s2 + $0x2b] sm:$0x1] %v1955_v31  ;;  %v666_v35 = vsel %vm190_vm3, %v665_v30, %v664_v32  ;;  %v669_v36 = vrot.slane %v1955_v31, 3 }
 0x3cf   :  { %v1959_v37 = vpop.eup %1958  ;;  %627 = vst [vmem:[%s2726_s2 + $0x33] sm:$0x1] %v1957_v34  ;;  %v668_v38 = vsel %vm193_vm4, %v667_v33, %v666_v35  ;;  %v671_v39 = vrot.slane %v1957_v34, 2  ;;  %v955_v35 = vld [vmem:[%s2724_s1 + $0x20] sm:$0xff] }
 0x3d0   :  { %628 = vst [vmem:[%s2726_s2 + $0x3b] sm:$0x1] %v1959_v37  ;;  %v670_v40 = vsel %vm196_vm5, %v669_v36, %v668_v38  ;;  %v673_v41 = vrot.slane %v1959_v37, 1  ;;  %v956_v36 = vld [vmem:[%s2724_s1 + $0x28] sm:$0xff]  ;;  %v958_v38 = vld [vmem:[%s2724_s1 + $0x38] sm:$0xff] }
 0x3d1   :  { %v672_v42 = vsel %vm199_vm6, %v671_v39, %v670_v40  ;;  %v1852_v37 = vpack.c.bf16 %v956_v36, %v955_v35  ;;  %v959_v40 = vld [vmem:[%s2724_s1 + $0x40] sm:$0xff] }
 0x3d2   :  { %v674_v43 = vsel %vm202_vm7, %v673_v41, %v672_v42  ;;  %v960_v41 = vld [vmem:[%s2724_s1 + $0x48] sm:$0xff]  ;;  %v943_v36 = vld [vmem:[%s2725_s0 + $0x6] sm:$0x1] }
 0x3d3   :  { %1594 = vmatmul.mubr.f32.vlgmr.msra.gmra.mrb[4].mxu0 %v674_v43  ;;  %v1858_v42 = vpack.c.bf16 %v960_v41, %v959_v40  ;;  %v961_v43 = vld [vmem:[%s2724_s1 + $0x50] sm:$0xff] }
 0x3d4   :  { %1663 = vmatprep.mubr.msk.f32.mxu0 %vm2025_vm0, %v2026_v4  ;;  %1847 = vmatpush3.bf16.msra.mxu0 %v2448_v47  ;;  %v1861_v45 = vpack.c.bf16 %v962_v44, %v961_v43 }
 0x3d5   :  { %1848 = vmatprep.subr.bf16.mxu0 %v2024_v0 }
 0x3d8   :  { %1850 = vmatpush3.bf16.msra.mxu0 %v2454_v49 }
 0x3d9   :  { %1851 = vmatprep.subr.bf16.mxu0 %v2024_v0 }
 0x3dc   :  { %1853 = vmatpush3.bf16.msra.mxu0 %v1852_v37 }
 0x3dd   :  { %1854 = vmatprep.subr.bf16.mxu0 %v2024_v0 }
 0x4a6   :  { %v742_v55 = vpop.f32.mrb[4].mxu0 }
 0x4a7   :  { %v747_v56 = vrot.slane %v742_v55, 1  ;;  %v748_v57 = vrot.slane %v742_v55, 2  ;;  %v749_v58 = vrot.slane %v742_v55, 3  ;;  %v750_v5 = vrot.slane %v742_v55, 4  ;;  %v1595_v7 = vpop.f32.mrb[5].mxu0 }
 0x4a8   :  { %v751_v13 = vrot.slane %v742_v55, 5  ;;  %v752_v16 = vrot.slane %v742_v55, 6  ;;  %v762_v19 = vadd.f32 %v742_v55, %v629_v50  ;;  %v753_v22 = vrot.slane %v742_v55, 7  ;;  %v966_v50 = vld [vmem:[%s2724_s1 + $0x78] sm:$0xff] }
 0x4a9   :  { %v763_v25 = vadd.f32 %v747_v56, %v630_v51  ;;  %v764_v59 = vadd.f32 %v748_v57, %v631_v52  ;;  %v765_v60 = vadd.f32 %v749_v58, %v632_v53  ;;  %v766_v62 = vadd.f32 %v750_v5, %v633_v54  ;;  %v786_v52 = vld [vmem:[%s2725_s0 + $0x5] sm:$0x1]  ;;  %v787_v53 = vld [vmem:[%s2725_s0 + $0xd] sm:$0x1]  ;;  %v788_v54 = vld [vmem:[%s2725_s0 + $0x15] sm:$0x1] }
 0x4aa   :  { %1960 = vtanh.f32 %v762_v19  ;;  %v767_v1 = vadd.f32 %v751_v13, %v634_v10  ;;  %v768_v2 = vadd.f32 %v752_v16, %v635_v61  ;;  %v769_v3 = vadd.f32 %v753_v22, %v636_v63  ;;  %v789_v55 = vld [vmem:[%s2725_s0 + $0x1d] sm:$0x1]  ;;  %v791_v13 = vld [vmem:[%s2725_s0 + $0x2d] sm:$0x1] }
 0x4ab   :  { %1962 = vtanh.f32 %v763_v25 }
 0x4ac   :  { %1964 = vtanh.f32 %v764_v59 }
 0x4ad   :  { %1966 = vtanh.f32 %v765_v60 }
 0x4ae   :  { %1968 = vtanh.f32 %v766_v62  ;;  %v792_v62 = vld [vmem:[%s2725_s0 + $0x35] sm:$0x1] }
 0x4af   :  { %1970 = vtanh.f32 %v767_v1  ;;  %v793_v1 = vld [vmem:[%s2725_s0 + $0x3d] sm:$0x1] }
 0x4b0   :  { %1972 = vtanh.f32 %v768_v2 }
 0x4b1   :  { %1974 = vtanh.f32 %v769_v3 }
 0x4b4   :  { %v1961_v6 = vpop.eup %1960 }
 0x4b5   :  { %v1963_v8 = vpop.eup %1962  ;;  %778 = vst [vmem:[%s2726_s2 + $0x4] sm:$0x1] %v1961_v6 }
 0x4b6   :  { %v1965_v9 = vpop.eup %1964  ;;  %779 = vst [vmem:[%s2726_s2 + $0xc] sm:$0x1] %v1963_v8  ;;  %v818_v11 = vrot.slane %v1963_v8, 7 }
 0x4b7   :  { %v1967_v12 = vpop.eup %1966  ;;  %780 = vst [vmem:[%s2726_s2 + $0x14] sm:$0x1] %v1965_v9  ;;  %v820_v14 = vrot.slane %v1965_v9, 6 }
 0x4b8   :  { %v1969_v15 = vpop.eup %1968  ;;  %781 = vst [vmem:[%s2726_s2 + $0x1c] sm:$0x1] %v1967_v12  ;;  %v819_v17 = vsel %vm184_vm1, %v818_v11, %v1961_v6  ;;  %v822_v18 = vrot.slane %v1967_v12, 5 }
 0x4b9   :  { %v1971_v20 = vpop.eup %1970  ;;  %782 = vst [vmem:[%s2726_s2 + $0x24] sm:$0x1] %v1969_v15  ;;  %v821_v21 = vsel %vm187_vm2, %v820_v14, %v819_v17  ;;  %v824_v23 = vrot.slane %v1969_v15, 4 }
 0x4ba   :  { %v1973_v24 = vpop.eup %1972  ;;  %783 = vst [vmem:[%s2726_s2 + $0x2c] sm:$0x1] %v1971_v20  ;;  %v823_v26 = vsel %vm190_vm3, %v822_v18, %v821_v21  ;;  %v826_v27 = vrot.slane %v1971_v20, 3 }
 0x4bb   :  { %v1975_v28 = vpop.eup %1974  ;;  %784 = vst [vmem:[%s2726_s2 + $0x34] sm:$0x1] %v1973_v24  ;;  %v825_v29 = vsel %vm193_vm4, %v824_v23, %v823_v26  ;;  %v828_v30 = vrot.slane %v1973_v24, 2 }
 0x4bc   :  { %785 = vst [vmem:[%s2726_s2 + $0x3c] sm:$0x1] %v1975_v28  ;;  %v827_v31 = vsel %vm196_vm5, %v826_v27, %v825_v29  ;;  %v830_v32 = vrot.slane %v1975_v28, 1 }
 0x4bd   :  { %v829_v33 = vsel %vm199_vm6, %v828_v30, %v827_v31 }
 0x4be   :  { %v831_v34 = vsel %vm202_vm7, %v830_v32, %v829_v33 }
 0x4bf   :  { %1629 = vmatmul.mubr.f32.vlgmr.msra.gmra.mrb[4].mxu1 %v831_v34 }
 0x4c0   :  { %1871 = vmatpush3.bf16.msra.mxu1 %v2448_v47  ;;  %1698 = vmatprep.mubr.msk.f32.mxu1 %vm2025_vm0, %v2026_v4  ;;  %v957_v4 = vld [vmem:[%s2724_s1 + $0x30] sm:$0xff]  ;;  %v964_v47 = vld [vmem:[%s2724_s1 + $0x68] sm:$0xff] }
 0x4c1   :  { %1872 = vmatprep.subr.bf16.mxu1 %v2024_v0  ;;  %v1855_v39 = vpack.c.bf16 %v958_v38, %v957_v4  ;;  %v1864_v48 = vpack.c.bf16 %v964_v47, %v963_v46  ;;  %v945_v4 = vld [vmem:[%s2725_s0 + $0x16] sm:$0x1]  ;;  %v946_v38 = vld [vmem:[%s2725_s0 + $0x1e] sm:$0x1]  ;;  %v948_v46 = vld [vmem:[%s2725_s0 + $0x2e] sm:$0x1] }
 0x4c3   :  { %1856 = vmatpush3.bf16.msra.mxu0 %v1855_v39 }
 0x4c4   :  { %1874 = vmatpush3.bf16.msra.mxu1 %v2454_v49  ;;  %1857 = vmatprep.subr.bf16.mxu0 %v2024_v0  ;;  %v965_v49 = vld [vmem:[%s2724_s1 + $0x70] sm:$0xff] }
 0x4c5   :  { %1875 = vmatprep.subr.bf16.mxu1 %v2024_v0  ;;  %v1867_v51 = vpack.c.bf16 %v966_v50, %v965_v49 }
 0x4c7   :  { %1859 = vmatpush3.bf16.msra.mxu0 %v1858_v42 }
 0x4c8   :  { %1877 = vmatpush3.bf16.msra.mxu1 %v1852_v37  ;;  %1860 = vmatprep.subr.bf16.mxu0 %v2024_v0  ;;  %v944_v37 = vld [vmem:[%s2725_s0 + $0xe] sm:$0x1] }
 0x4c9   :  { %1878 = vmatprep.subr.bf16.mxu1 %v2024_v0 }
 0x4cb   :  { %1862 = vmatpush3.bf16.msra.mxu0 %v1861_v45 }
 0x4cc   :  { %1880 = vmatpush3.bf16.msra.mxu1 %v1855_v39  ;;  %1863 = vmatprep.subr.bf16.mxu0 %v2024_v0  ;;  %v947_v39 = vld [vmem:[%s2725_s0 + $0x26] sm:$0x1] }
 0x4cd   :  { %1881 = vmatprep.subr.bf16.mxu1 %v2024_v0 }
 0x4cf   :  { %1865 = vmatpush3.bf16.msra.mxu0 %v1864_v48 }
 0x4d0   :  { %1883 = vmatpush3.bf16.msra.mxu1 %v1858_v42  ;;  %1866 = vmatprep.subr.bf16.mxu0 %v2024_v0 }
 0x4d1   :  { %1884 = vmatprep.subr.bf16.mxu1 %v2024_v0 }
 0x4d3   :  { %1868 = vmatpush3.bf16.msra.mxu0 %v1867_v51 }
 0x4d4   :  { %1886 = vmatpush3.bf16.msra.mxu1 %v1861_v45 }
 0x4d5   :  { %1887 = vmatprep.subr.bf16.mxu1 %v2024_v0 }
 0x4d8   :  { %1889 = vmatpush3.bf16.msra.mxu1 %v1864_v48 }
 0x4d9   :  { %1890 = vmatprep.subr.bf16.mxu1 %v2024_v0  ;;  %v790_v0 = vld [vmem:[%s2725_s0 + $0x25] sm:$0x1] }
 0x4dc   :  { %1892 = vmatpush3.bf16.msra.mxu1 %v1867_v51 }
 0x592   :  { %v899_v56 = vpop.f32.mrb[4].mxu1 }
 0x593   :  { %v904_v57 = vrot.slane %v899_v56, 1  ;;  %v905_v58 = vrot.slane %v899_v56, 2  ;;  %v906_v5 = vrot.slane %v899_v56, 3  ;;  %v907_v7 = vrot.slane %v899_v56, 4  ;;  %v1630_v10 = vpop.f32.mrb[5].mxu1 }
 0x594   :  { %v908_v16 = vrot.slane %v899_v56, 5  ;;  %v909_v19 = vrot.slane %v899_v56, 6  ;;  %v919_v22 = vadd.f32 %v899_v56, %v786_v52  ;;  %v910_v25 = vrot.slane %v899_v56, 7 }
 0x595   :  { %v920_v59 = vadd.f32 %v904_v57, %v787_v53  ;;  %v921_v60 = vadd.f32 %v905_v58, %v788_v54  ;;  %v922_v61 = vadd.f32 %v906_v5, %v789_v55  ;;  %v923_v63 = vadd.f32 %v907_v7, %v790_v0  ;;  %v949_v54 = vld [vmem:[%s2725_s0 + $0x36] sm:$0x1]  ;;  %v950_v0 = vld [vmem:[%s2725_s0 + $0x3e] sm:$0x1] }
 0x596   :  { %1976 = vtanh.f32 %v919_v22  ;;  %v924_v2 = vadd.f32 %v908_v16, %v791_v13  ;;  %v925_v3 = vadd.f32 %v909_v19, %v792_v62  ;;  %v926_v6 = vadd.f32 %v910_v25, %v793_v1 }
 0x597   :  { %1978 = vtanh.f32 %v920_v59 }
 0x598   :  { %1980 = vtanh.f32 %v921_v60 }
 0x599   :  { %1982 = vtanh.f32 %v922_v61 }
 0x59a   :  { %1984 = vtanh.f32 %v923_v63 }
 0x59b   :  { %1986 = vtanh.f32 %v924_v2 }
 0x59c   :  { %1988 = vtanh.f32 %v925_v3 }
 0x59d   :  { %1990 = vtanh.f32 %v926_v6 }
 0x5a0   :  { %v1977_v8 = vpop.eup %1976 }
 0x5a1   :  { %v1979_v9 = vpop.eup %1978  ;;  %935 = vst [vmem:[%s2726_s2 + $0x5] sm:$0x1] %v1977_v8 }
 0x5a2   :  { %v1981_v11 = vpop.eup %1980  ;;  %936 = vst [vmem:[%s2726_s2 + $0xd] sm:$0x1] %v1979_v9  ;;  %v975_v12 = vrot.slane %v1979_v9, 7 }
 0x5a3   :  { %v1983_v14 = vpop.eup %1982  ;;  %937 = vst [vmem:[%s2726_s2 + $0x15] sm:$0x1] %v1981_v11  ;;  %v977_v15 = vrot.slane %v1981_v11, 6 }
 0x5a4   :  { %v1985_v17 = vpop.eup %1984  ;;  %938 = vst [vmem:[%s2726_s2 + $0x1d] sm:$0x1] %v1983_v14  ;;  %v976_v18 = vsel %vm184_vm1, %v975_v12, %v1977_v8  ;;  %v979_v20 = vrot.slane %v1983_v14, 5 }
 0x5a5   :  { %v1987_v21 = vpop.eup %1986  ;;  %939 = vst [vmem:[%s2726_s2 + $0x25] sm:$0x1] %v1985_v17  ;;  %v978_v23 = vsel %vm187_vm2, %v977_v15, %v976_v18  ;;  %v981_v24 = vrot.slane %v1985_v17, 4  ;;  %v1100_v15 = vld [vmem:[%s2725_s0 + $0x7] sm:$0x1] }
 0x5a6   :  { %v1989_v26 = vpop.eup %1988  ;;  %940 = vst [vmem:[%s2726_s2 + $0x2d] sm:$0x1] %v1987_v21  ;;  %v980_v27 = vsel %vm190_vm3, %v979_v20, %v978_v23  ;;  %v983_v28 = vrot.slane %v1987_v21, 3  ;;  %v1101_v17 = vld [vmem:[%s2725_s0 + $0xf] sm:$0x1] }
 0x5a7   :  { %v1991_v29 = vpop.eup %1990  ;;  %941 = vst [vmem:[%s2726_s2 + $0x35] sm:$0x1] %v1989_v26  ;;  %v982_v30 = vsel %vm193_vm4, %v981_v24, %v980_v27  ;;  %v985_v31 = vrot.slane %v1989_v26, 2  ;;  %v1102_v18 = vld [vmem:[%s2725_s0 + $0x17] sm:$0x1] }
 0x5a8   :  { %942 = vst [vmem:[%s2726_s2 + $0x3d] sm:$0x1] %v1991_v29  ;;  %v984_v32 = vsel %vm196_vm5, %v983_v28, %v982_v30  ;;  %v987_v33 = vrot.slane %v1991_v29, 1  ;;  %v1103_v20 = vld [vmem:[%s2725_s0 + $0x1f] sm:$0x1] }
 0x5a9   :  { %v986_v34 = vsel %vm199_vm6, %v985_v31, %v984_v32  ;;  %v1104_v21 = vld [vmem:[%s2725_s0 + $0x27] sm:$0x1]  ;;  %v1105_v30 = vld [vmem:[%s2725_s0 + $0x2f] sm:$0x1] }
 0x5aa   :  { %v988_v35 = vsel %vm202_vm7, %v987_v33, %v986_v34  ;;  %v1106_v34 = vld [vmem:[%s2725_s0 + $0x37] sm:$0x1] }
 0x5ab   :  { %1664 = vmatmul.mubr.f32.vlgmr.msra.gmra.mrb[6].mxu0 %v988_v35 }
 0x67e   :  { %v1056_v40 = vpop.f32.mrb[6].mxu0 }
 0x67f   :  { %v1061_v41 = vrot.slane %v1056_v40, 1  ;;  %v1062_v42 = vrot.slane %v1056_v40, 2  ;;  %v1063_v43 = vrot.slane %v1056_v40, 3  ;;  %v1064_v44 = vrot.slane %v1056_v40, 4  ;;  %v1665_v45 = vpop.f32.mrb[7].mxu0 }
 0x680   :  { %v1065_v47 = vrot.slane %v1056_v40, 5  ;;  %v1066_v48 = vrot.slane %v1056_v40, 6  ;;  %v1076_v49 = vadd.f32 %v1056_v40, %v943_v36  ;;  %v1067_v50 = vrot.slane %v1056_v40, 7 }
 0x681   :  { %v1077_v51 = vadd.f32 %v1061_v41, %v944_v37  ;;  %v1078_v52 = vadd.f32 %v1062_v42, %v945_v4  ;;  %v1079_v53 = vadd.f32 %v1063_v43, %v946_v38  ;;  %v1080_v55 = vadd.f32 %v1064_v44, %v947_v39  ;;  %v1107_v38 = vld [vmem:[%s2725_s0 + $0x3f] sm:$0x1] }
 0x682   :  { %1992 = vtanh.f32 %v1076_v49  ;;  %v1081_v56 = vadd.f32 %v1065_v47, %v948_v46  ;;  %v1082_v57 = vadd.f32 %v1066_v48, %v949_v54  ;;  %v1083_v58 = vadd.f32 %v1067_v50, %v950_v0 }
 0x683   :  { %1994 = vtanh.f32 %v1077_v51 }
 0x684   :  { %1996 = vtanh.f32 %v1078_v52 }
 0x685   :  { %1998 = vtanh.f32 %v1079_v53 }
 0x686   :  { %2000 = vtanh.f32 %v1080_v55 }
 0x687   :  { %2002 = vtanh.f32 %v1081_v56 }
 0x688   :  { %2004 = vtanh.f32 %v1082_v57 }
 0x689   :  { %2006 = vtanh.f32 %v1083_v58 }
 0x68c   :  { %v1993_v5 = vpop.eup %1992 }
 0x68d   :  { %v1995_v7 = vpop.eup %1994  ;;  %1092 = vst [vmem:[%s2726_s2 + $0x6] sm:$0x1] %v1993_v5 }
 0x68e   :  { %v1997_v10 = vpop.eup %1996  ;;  %1093 = vst [vmem:[%s2726_s2 + $0xe] sm:$0x1] %v1995_v7  ;;  %v1132_v13 = vrot.slane %v1995_v7, 7 }
 0x68f   :  { %v1999_v16 = vpop.eup %1998  ;;  %1094 = vst [vmem:[%s2726_s2 + $0x16] sm:$0x1] %v1997_v10  ;;  %v1134_v19 = vrot.slane %v1997_v10, 6 }
 0x690   :  { %v2001_v22 = vpop.eup %2000  ;;  %1095 = vst [vmem:[%s2726_s2 + $0x1e] sm:$0x1] %v1999_v16  ;;  %v1133_v25 = vsel %vm184_vm1, %v1132_v13, %v1993_v5  ;;  %v1136_v59 = vrot.slane %v1999_v16, 5 }
 0x691   :  { %v2003_v60 = vpop.eup %2002  ;;  %1096 = vst [vmem:[%s2726_s2 + $0x26] sm:$0x1] %v2001_v22  ;;  %v1135_v61 = vsel %vm187_vm2, %v1134_v19, %v1133_v25  ;;  %v1138_v62 = vrot.slane %v2001_v22, 4 }
 0x692   :  { %v2005_v63 = vpop.eup %2004  ;;  %1097 = vst [vmem:[%s2726_s2 + $0x2e] sm:$0x1] %v2003_v60  ;;  %v1137_v1 = vsel %vm190_vm3, %v1136_v59, %v1135_v61  ;;  %v1140_v2 = vrot.slane %v2003_v60, 3 }
 0x693   :  { %v2007_v3 = vpop.eup %2006  ;;  %1098 = vst [vmem:[%s2726_s2 + $0x36] sm:$0x1] %v2005_v63  ;;  %v1139_v6 = vsel %vm193_vm4, %v1138_v62, %v1137_v1  ;;  %v1142_v8 = vrot.slane %v2005_v63, 2 }
 0x694   :  { %1099 = vst [vmem:[%s2726_s2 + $0x3e] sm:$0x1] %v2007_v3  ;;  %v1141_v9 = vsel %vm196_vm5, %v1140_v2, %v1139_v6  ;;  %v1144_v11 = vrot.slane %v2007_v3, 1 }
 0x695   :  { %v1143_v12 = vsel %vm199_vm6, %v1142_v8, %v1141_v9 }
 0x696   :  { %v1145_v14 = vsel %vm202_vm7, %v1144_v11, %v1143_v12 }
 0x697   :  { %1699 = vmatmul.mubr.f32.vlgmr.msra.gmra.mrb[6].mxu1 %v1145_v14 }
 0x76a   :  { %v1213_v23 = vpop.f32.mrb[6].mxu1 }
 0x76b   :  { %v1218_v24 = vrot.slane %v1213_v23, 1  ;;  %v1219_v26 = vrot.slane %v1213_v23, 2  ;;  %v1220_v27 = vrot.slane %v1213_v23, 3  ;;  %v1221_v28 = vrot.slane %v1213_v23, 4  ;;  %v1700_v29 = vpop.f32.mrb[7].mxu1 }
 0x76c   :  { %v1222_v31 = vrot.slane %v1213_v23, 5  ;;  %v1223_v32 = vrot.slane %v1213_v23, 6  ;;  %v1233_v33 = vadd.f32 %v1213_v23, %v1100_v15  ;;  %v1224_v35 = vrot.slane %v1213_v23, 7 }
 0x76d   :  { %v1234_v36 = vadd.f32 %v1218_v24, %v1101_v17  ;;  %v1235_v37 = vadd.f32 %v1219_v26, %v1102_v18  ;;  %v1236_v4 = vadd.f32 %v1220_v27, %v1103_v20  ;;  %v1237_v39 = vadd.f32 %v1221_v28, %v1104_v21 }
 0x76e   :  { %2008 = vtanh.f32 %v1233_v33  ;;  %v1238_v40 = vadd.f32 %v1222_v31, %v1105_v30  ;;  %v1239_v41 = vadd.f32 %v1223_v32, %v1106_v34  ;;  %v1240_v42 = vadd.f32 %v1224_v35, %v1107_v38 }
 0x76f   :  { %2010 = vtanh.f32 %v1234_v36 }
 0x770   :  { %2012 = vtanh.f32 %v1235_v37 }
 0x771   :  { %2014 = vtanh.f32 %v1236_v4 }
 0x772   :  { %2016 = vtanh.f32 %v1237_v39 }
 0x773   :  { %2018 = vtanh.f32 %v1238_v40 }
 0x774   :  { %2020 = vtanh.f32 %v1239_v41 }
 0x775   :  { %2022 = vtanh.f32 %v1240_v42 }
 0x778   :  { %v2009_v43 = vpop.eup %2008 }
 0x779   :  { %v2011_v44 = vpop.eup %2010  ;;  %1249 = vst [vmem:[%s2726_s2 + $0x7] sm:$0x1] %v2009_v43 }
 0x77a   :  { %v2013_v45 = vpop.eup %2012  ;;  %1250 = vst [vmem:[%s2726_s2 + $0xf] sm:$0x1] %v2011_v44 }
 0x77b   :  { %v2015_v46 = vpop.eup %2014  ;;  %1251 = vst [vmem:[%s2726_s2 + $0x17] sm:$0x1] %v2013_v45 }
 0x77c   :  { %v2017_v47 = vpop.eup %2016  ;;  %1252 = vst [vmem:[%s2726_s2 + $0x1f] sm:$0x1] %v2015_v46 }
 0x77d   :  { %v2019_v48 = vpop.eup %2018  ;;  %1253 = vst [vmem:[%s2726_s2 + $0x27] sm:$0x1] %v2017_v47 }
 0x77e   :  { %v2021_v49 = vpop.eup %2020  ;;  %1254 = vst [vmem:[%s2726_s2 + $0x2f] sm:$0x1] %v2019_v48 }
 0x77f   :  { %v2023_v50 = vpop.eup %2022  ;;  %1255 = vst [vmem:[%s2726_s2 + $0x37] sm:$0x1] %v2021_v49 }
 0x780   :  { %1256 = vst [vmem:[%s2726_s2 + $0x3f] sm:$0x1] %v2023_v50 }

</bundles_post_ra>
